<compile_context>
chip_gen: v6e
topology: v6e:2x2x1
jax: 0.10.0
libtpu: 0.0.40
codegen_flags: <defaults>
</compile_context>

<pallas_src>
import jax
import jax.numpy as jnp
from jax.experimental import pallas as pl
from jax.experimental.pallas import tpu as pltpu

N_CHORDS = 16
N_PITCH = 12
N_MAIN_QUALITY = 3
N_EXTRA_QUALITY = 3
SIZE_INPUT = N_CHORDS * (N_PITCH * N_MAIN_QUALITY + N_EXTRA_QUALITY)  # 624
SIZE_HIDDEN = 400
SIZE_LATENT = 40


def _round_up(n, m):
    return ((n + m - 1) // m) * m


SIZE_INPUT_PAD = _round_up(SIZE_INPUT, 128)  # 640: lane-dense fc1/fc4 + recon store


def vae_kernel(x_ref, eps_ref,
               w1_ref, b1_ref, wml_ref, bml_ref,
               w3_ref, b3_ref, w4_ref, b4_ref,
               recon_ref, ml_ref):
    # encode: h1 = relu(x @ W1 + b1)                      (TB, 640) @ (640, 400)
    h1 = jnp.dot(x_ref[...], w1_ref[...],
                 preferred_element_type=jnp.float32) + b1_ref[...]
    h1 = jnp.maximum(h1, 0.0).astype(w1_ref.dtype)

    # fused fc21|fc22: a single 80-wide matmul (one 128-lane MXU tile)
    ml = jnp.dot(h1, wml_ref[...],
                 preferred_element_type=jnp.float32) + bml_ref[...]   # (TB, 80)
    mu = ml[:, :SIZE_LATENT]
    logvar = ml[:, SIZE_LATENT:]

    # reparameterize: z = mu + eps * exp(0.5 * logvar)    (f32)
    z = mu + eps_ref[...] * jnp.exp(0.5 * logvar)

    # decode: h3 = relu(z @ W3 + b3); recon = sigmoid(h3 @ W4 + b4)
    h3 = jnp.dot(z.astype(w3_ref.dtype), w3_ref[...],
                 preferred_element_type=jnp.float32) + b3_ref[...]
    h3 = jnp.maximum(h3, 0.0).astype(w4_ref.dtype)
    logits = jnp.dot(h3, w4_ref[...],
                     preferred_element_type=jnp.float32) + b4_ref[...]
    # sigmoid via EUP approx-reciprocal
    recon_ref[...] = pl.reciprocal(1.0 + jnp.exp(-logits), approx=True)

    # fused (mu | logvar) store — one f32 store per tile, split in the wrapper
    ml_ref[...] = ml


def vae_forward(x, eps, params, *, block_b=256, compute_dtype=jnp.bfloat16):
    """x: (B, 16, 39) or (B, 624); eps: (B, 40).

    Returns (recon (B, 16, 39), mu (B, 40), logvar (B, 40)), all f32.
    """
    B = x.shape[0]
    x_flat = x.reshape(B, SIZE_INPUT)

    (w1, b1, w21, b21, w22, b22, w3, b3, w4, b4) = params
    pad_in = SIZE_INPUT_PAD - SIZE_INPUT

    # Weights stored (in, out); pad lane dims to 128 multiples, fuse fc21|fc22,
    # cast to bf16 for the MXU.  Biases stay f32 (added after f32 accumulation).
    w1p = jnp.pad(w1, ((0, pad_in), (0, 0))).astype(compute_dtype)    # (640, 400)
    b1c = b1.astype(jnp.float32)                                      # (1, 400)
    wml = jnp.concatenate([w21, w22], axis=1).astype(compute_dtype)   # (400, 80)
    bml = jnp.concatenate([b21, b22], axis=1).astype(jnp.float32)     # (1, 80)
    w3c = w3.astype(compute_dtype)                                    # (40, 400)
    b3c = b3.astype(jnp.float32)                                      # (1, 400)
    w4p = jnp.pad(w4, ((0, 0), (0, pad_in))).astype(compute_dtype)    # (400, 640)
    b4p = jnp.pad(b4, ((0, 0), (0, pad_in))).astype(jnp.float32)      # (1, 640)

    # Batch tiling: tile is a multiple of 16 (bf16 sublane packing) unless it
    # covers the whole (row-padded) batch; batch rows padded to a tile multiple.
    tb = min(_round_up(block_b, 16), _round_up(B, 8))
    b_pad = _round_up(B, tb)
    n_steps = b_pad // tb

    xp = jnp.pad(x_flat, ((0, b_pad - B), (0, pad_in))).astype(compute_dtype)
    epsp = jnp.pad(eps, ((0, b_pad - B), (0, 0))).astype(jnp.float32)

    def row_spec(cols):
        return pl.BlockSpec((tb, cols), lambda i: (i, 0))

    def resident(arr):  # whole array, same block every grid step -> stays in VMEM
        return pl.BlockSpec(arr.shape, lambda i: (0, 0))

    in_arrays = (xp, epsp, w1p, b1c, wml, bml, w3c, b3c, w4p, b4p)
    in_specs = [row_spec(SIZE_INPUT_PAD), row_spec(SIZE_LATENT)] + \
               [resident(a) for a in in_arrays[2:]]
    out_specs = (row_spec(SIZE_INPUT_PAD), row_spec(2 * SIZE_LATENT))
    out_shape = (
        jax.ShapeDtypeStruct((b_pad, SIZE_INPUT_PAD), jnp.float32),   # recon (padded)
        jax.ShapeDtypeStruct((b_pad, 2 * SIZE_LATENT), jnp.float32),  # mu | logvar
    )

    flops = 2 * b_pad * (SIZE_INPUT_PAD * SIZE_HIDDEN
                         + SIZE_HIDDEN * 2 * SIZE_LATENT
                         + SIZE_LATENT * SIZE_HIDDEN
                         + SIZE_HIDDEN * SIZE_INPUT_PAD)
    transcendentals = b_pad * (SIZE_LATENT + SIZE_INPUT_PAD)
    in_bytes = sum(int(a.size) * a.dtype.itemsize for a in in_arrays)
    out_bytes = b_pad * (SIZE_INPUT_PAD + 2 * SIZE_LATENT) * 4
    cost = pl.CostEstimate(flops=int(flops),
                           transcendentals=int(transcendentals),
                           bytes_accessed=int(in_bytes + out_bytes))

    recon_p, ml_p = pl.pallas_call(
        vae_kernel,
        out_shape=out_shape,
        grid_spec=pl.GridSpec(grid=(n_steps,), in_specs=in_specs,
                              out_specs=out_specs),
        compiler_params=pltpu.CompilerParams(
            dimension_semantics=("parallel",)),
        cost_estimate=cost,
    )(*in_arrays)

    recon = recon_p[:B, :SIZE_INPUT].reshape(
        B, N_CHORDS, N_PITCH * N_MAIN_QUALITY + N_EXTRA_QUALITY)
    mu = ml_p[:B, :SIZE_LATENT]
    logvar = ml_p[:B, SIZE_LATENT:]
    return recon, mu, logvar


def init_params(key):
    """Deterministic init matching nn.Linear shapes (stored transposed: (in, out))."""
    def linear(key, fan_in, fan_out):
        kw, kb = jax.random.split(key)
        bound = 1.0 / jnp.sqrt(fan_in)
        w = jax.random.uniform(kw, (fan_in, fan_out), jnp.float32, -bound, bound)
        b = jax.random.uniform(kb, (1, fan_out), jnp.float32, -bound, bound)
        return w, b

    k1, k21, k22, k3, k4 = jax.random.split(key, 5)
    w1, b1 = linear(k1, SIZE_INPUT, SIZE_HIDDEN)
    w21, b21 = linear(k21, SIZE_HIDDEN, SIZE_LATENT)
    w22, b22 = linear(k22, SIZE_HIDDEN, SIZE_LATENT)
    w3, b3 = linear(k3, SIZE_LATENT, SIZE_HIDDEN)
    w4, b4 = linear(k4, SIZE_HIDDEN, SIZE_INPUT)
    return (w1, b1, w21, b21, w22, b22, w3, b3, w4, b4)


def ref_forward(x, eps, params, compute_dtype=jnp.bfloat16):
    """Pure-JAX reference mirroring the kernel's bf16-in / f32-accumulate math."""
    (w1, b1, w21, b21, w22, b22, w3, b3, w4, b4) = params
    c = lambda a: a.astype(compute_dtype)
    xf = x.reshape(x.shape[0], SIZE_INPUT)
    h1 = jnp.maximum(
        jnp.dot(c(xf), c(w1), preferred_element_type=jnp.float32) + b1, 0.0)
    mu = jnp.dot(c(h1), c(w21), preferred_element_type=jnp.float32) + b21
    logvar = jnp.dot(c(h1), c(w22), preferred_element_type=jnp.float32) + b22
    z = mu + eps * jnp.exp(0.5 * logvar)
    h3 = jnp.maximum(
        jnp.dot(c(z), c(w3), preferred_element_type=jnp.float32) + b3, 0.0)
    logits = jnp.dot(c(h3), c(w4), preferred_element_type=jnp.float32) + b4
    recon = jax.nn.sigmoid(logits)
    return recon.reshape(x.shape[0], N_CHORDS, -1), mu, logvar


if __name__ == "__main__":
    key = jax.random.PRNGKey(0)
    k_params, k_x, k_eps, k_x2, k_eps2 = jax.random.split(key, 5)
    params = init_params(k_params)

    # --- small batch (matches the module's view(-1, 16*39) input) ------------
    B = 4
    x = jax.random.uniform(
        k_x, (B, N_CHORDS, N_PITCH * N_MAIN_QUALITY + N_EXTRA_QUALITY), jnp.float32)
    # eps for reparameterize (torch.randn_like) supplied explicitly for determinism.
    eps = jax.random.normal(k_eps, (B, SIZE_LATENT), jnp.float32)

    recon, mu, logvar = vae_forward(x, eps, params)
    jax.block_until_ready((recon, mu, logvar))

    r_ref, mu_ref, lv_ref = ref_forward(x, eps, params)
    assert recon.shape == (B, 16, 39) and mu.shape == (B, 40) and logvar.shape == (B, 40)
    assert jnp.allclose(recon, r_ref, atol=2e-2, rtol=2e-2), "recon mismatch"
    assert jnp.allclose(mu, mu_ref, atol=2e-2, rtol=2e-2), "mu mismatch"
    assert jnp.allclose(logvar, lv_ref, atol=2e-2, rtol=2e-2), "logvar mismatch"

    # --- larger batch: exercises the multi-step batch grid + row padding -----
    B2 = 200
    x2 = jax.random.uniform(
        k_x2, (B2, N_CHORDS, N_PITCH * N_MAIN_QUALITY + N_EXTRA_QUALITY), jnp.float32)
    eps2 = jax.random.normal(k_eps2, (B2, SIZE_LATENT), jnp.float32)
    recon2, mu2, lv2 = vae_forward(x2, eps2, params, block_b=64)
    jax.block_until_ready((recon2, mu2, lv2))
    r2_ref, mu2_ref, lv2_ref = ref_forward(x2, eps2, params)
    assert recon2.shape == (B2, 16, 39)
    assert jnp.allclose(recon2, r2_ref, atol=2e-2, rtol=2e-2), "recon mismatch (B=200)"
    assert jnp.allclose(mu2, mu2_ref, atol=2e-2, rtol=2e-2), "mu mismatch (B=200)"
    assert jnp.allclose(lv2, lv2_ref, atol=2e-2, rtol=2e-2), "logvar mismatch (B=200)"

    print("KERNEL_OK")
</pallas_src>

<mosaic_0001>
module attributes {stable_mosaic.version = 11 : i64} {
  func.func @vae_kernel(%arg0: i32, %arg1: memref<8x640xbf16, #tpu.memory_space<vmem>>, %arg2: memref<8x40xf32, #tpu.memory_space<vmem>>, %arg3: memref<640x400xbf16, #tpu.memory_space<vmem>>, %arg4: memref<1x400xf32, #tpu.memory_space<vmem>>, %arg5: memref<400x80xbf16, #tpu.memory_space<vmem>>, %arg6: memref<1x80xf32, #tpu.memory_space<vmem>>, %arg7: memref<40x400xbf16, #tpu.memory_space<vmem>>, %arg8: memref<1x400xf32, #tpu.memory_space<vmem>>, %arg9: memref<400x640xbf16, #tpu.memory_space<vmem>>, %arg10: memref<1x640xf32, #tpu.memory_space<vmem>>, %arg11: memref<8x640xf32, #tpu.memory_space<vmem>>, %arg12: memref<8x80xf32, #tpu.memory_space<vmem>>) attributes {dimension_semantics = [#tpu.dimension_semantics<parallel>], iteration_bounds = array<i64: 1>, scalar_prefetch = 0 : i64, scratch_operands = 0 : i64, tpu.core_type = #tpu.core_type<tc>, window_params = [{transform_indices = @transform_0, window_bounds = array<i64: 8, 640>}, {transform_indices = @transform_1, window_bounds = array<i64: 8, 40>}, {pipeline_mode = #tpu.pipeline_mode<synchronous>, transform_indices = @transform_2, window_bounds = array<i64: 640, 400>}, {pipeline_mode = #tpu.pipeline_mode<synchronous>, transform_indices = @transform_3, window_bounds = array<i64: 1, 400>}, {pipeline_mode = #tpu.pipeline_mode<synchronous>, transform_indices = @transform_4, window_bounds = array<i64: 400, 80>}, {pipeline_mode = #tpu.pipeline_mode<synchronous>, transform_indices = @transform_5, window_bounds = array<i64: 1, 80>}, {pipeline_mode = #tpu.pipeline_mode<synchronous>, transform_indices = @transform_6, window_bounds = array<i64: 40, 400>}, {pipeline_mode = #tpu.pipeline_mode<synchronous>, transform_indices = @transform_7, window_bounds = array<i64: 1, 400>}, {pipeline_mode = #tpu.pipeline_mode<synchronous>, transform_indices = @transform_8, window_bounds = array<i64: 400, 640>}, {pipeline_mode = #tpu.pipeline_mode<synchronous>, transform_indices = @transform_9, window_bounds = array<i64: 1, 640>}, {transform_indices = @transform_10, window_bounds = array<i64: 8, 640>}, {transform_indices = @transform_11, window_bounds = array<i64: 8, 80>}]} {
    %c0 = arith.constant 0 : index
    %c0_0 = arith.constant 0 : index
    %0 = vector.load %arg1[%c0, %c0_0] : memref<8x640xbf16, #tpu.memory_space<vmem>>, vector<8x640xbf16>
    %c0_1 = arith.constant 0 : index
    %c0_2 = arith.constant 0 : index
    %1 = vector.load %arg3[%c0_1, %c0_2] : memref<640x400xbf16, #tpu.memory_space<vmem>>, vector<640x400xbf16>
    %cst = arith.constant dense<0.000000e+00> : vector<8x400xf32>
    %2 = tpu.matmul %0, %1, %cst {dimension_numbers = #tpu.dot_dimension_numbers<[1], [0], [0], [1], [0, 0, 1, 1], [], []>} : vector<8x640xbf16>, vector<640x400xbf16>, vector<8x400xf32> -> vector<8x400xf32>
    %c0_3 = arith.constant 0 : index
    %c0_4 = arith.constant 0 : index
    %3 = vector.load %arg4[%c0_3, %c0_4] : memref<1x400xf32, #tpu.memory_space<vmem>>, vector<1x400xf32>
    %4 = vector.broadcast %3 : vector<1x400xf32> to vector<8x400xf32>
    %5 = arith.addf %2, %4 : vector<8x400xf32>
    %cst_5 = arith.constant 0.000000e+00 : f32
    %6 = vector.broadcast %cst_5 : f32 to vector<8x400xf32>
    %7 = arith.maximumf %5, %6 : vector<8x400xf32>
    %8 = arith.truncf %7 : vector<8x400xf32> to vector<8x400xbf16>
    %c0_6 = arith.constant 0 : index
    %c0_7 = arith.constant 0 : index
    %9 = vector.load %arg5[%c0_6, %c0_7] : memref<400x80xbf16, #tpu.memory_space<vmem>>, vector<400x80xbf16>
    %cst_8 = arith.constant dense<0.000000e+00> : vector<8x80xf32>
    %10 = tpu.matmul %8, %9, %cst_8 {dimension_numbers = #tpu.dot_dimension_numbers<[1], [0], [0], [1], [0, 0, 1, 1], [], []>} : vector<8x400xbf16>, vector<400x80xbf16>, vector<8x80xf32> -> vector<8x80xf32>
    %c0_9 = arith.constant 0 : index
    %c0_10 = arith.constant 0 : index
    %11 = vector.load %arg6[%c0_9, %c0_10] : memref<1x80xf32, #tpu.memory_space<vmem>>, vector<1x80xf32>
    %12 = vector.broadcast %11 : vector<1x80xf32> to vector<8x80xf32>
    %13 = arith.addf %10, %12 : vector<8x80xf32>
    %14 = vector.extract_strided_slice %13 {offsets = [0, 0], sizes = [8, 40], strides = [1, 1]} : vector<8x80xf32> to vector<8x40xf32>
    %15 = vector.extract_strided_slice %13 {offsets = [0, 40], sizes = [8, 40], strides = [1, 1]} : vector<8x80xf32> to vector<8x40xf32>
    %c0_11 = arith.constant 0 : index
    %c0_12 = arith.constant 0 : index
    %16 = vector.load %arg2[%c0_11, %c0_12] : memref<8x40xf32, #tpu.memory_space<vmem>>, vector<8x40xf32>
    %cst_13 = arith.constant 5.000000e-01 : f32
    %17 = vector.broadcast %cst_13 : f32 to vector<8x40xf32>
    %18 = arith.mulf %17, %15 : vector<8x40xf32>
    %19 = math.exp %18 : vector<8x40xf32>
    %20 = arith.mulf %16, %19 : vector<8x40xf32>
    %21 = arith.addf %14, %20 : vector<8x40xf32>
    %22 = arith.truncf %21 : vector<8x40xf32> to vector<8x40xbf16>
    %c0_14 = arith.constant 0 : index
    %c0_15 = arith.constant 0 : index
    %23 = vector.load %arg7[%c0_14, %c0_15] : memref<40x400xbf16, #tpu.memory_space<vmem>>, vector<40x400xbf16>
    %cst_16 = arith.constant dense<0.000000e+00> : vector<8x400xf32>
    %24 = tpu.matmul %22, %23, %cst_16 {dimension_numbers = #tpu.dot_dimension_numbers<[1], [0], [0], [1], [0, 0, 1, 1], [], []>} : vector<8x40xbf16>, vector<40x400xbf16>, vector<8x400xf32> -> vector<8x400xf32>
    %c0_17 = arith.constant 0 : index
    %c0_18 = arith.constant 0 : index
    %25 = vector.load %arg8[%c0_17, %c0_18] : memref<1x400xf32, #tpu.memory_space<vmem>>, vector<1x400xf32>
    %26 = vector.broadcast %25 : vector<1x400xf32> to vector<8x400xf32>
    %27 = arith.addf %24, %26 : vector<8x400xf32>
    %cst_19 = arith.constant 0.000000e+00 : f32
    %28 = vector.broadcast %cst_19 : f32 to vector<8x400xf32>
    %29 = arith.maximumf %27, %28 : vector<8x400xf32>
    %30 = arith.truncf %29 : vector<8x400xf32> to vector<8x400xbf16>
    %c0_20 = arith.constant 0 : index
    %c0_21 = arith.constant 0 : index
    %31 = vector.load %arg9[%c0_20, %c0_21] : memref<400x640xbf16, #tpu.memory_space<vmem>>, vector<400x640xbf16>
    %cst_22 = arith.constant dense<0.000000e+00> : vector<8x640xf32>
    %32 = tpu.matmul %30, %31, %cst_22 {dimension_numbers = #tpu.dot_dimension_numbers<[1], [0], [0], [1], [0, 0, 1, 1], [], []>} : vector<8x400xbf16>, vector<400x640xbf16>, vector<8x640xf32> -> vector<8x640xf32>
    %c0_23 = arith.constant 0 : index
    %c0_24 = arith.constant 0 : index
    %33 = vector.load %arg10[%c0_23, %c0_24] : memref<1x640xf32, #tpu.memory_space<vmem>>, vector<1x640xf32>
    %34 = vector.broadcast %33 : vector<1x640xf32> to vector<8x640xf32>
    %35 = arith.addf %32, %34 : vector<8x640xf32>
    %cst_25 = arith.constant 0.000000e+00 : f32
    %36 = vector.broadcast %cst_25 : f32 to vector<8x640xf32>
    %37 = arith.subf %36, %35 : vector<8x640xf32>
    %38 = math.exp %37 : vector<8x640xf32>
    %cst_26 = arith.constant 1.000000e+00 : f32
    %39 = vector.broadcast %cst_26 : f32 to vector<8x640xf32>
    %40 = arith.addf %39, %38 : vector<8x640xf32>
    %41 = tpu.reciprocal %40 {approx = true} : vector<8x640xf32> -> vector<8x640xf32>
    %c0_27 = arith.constant 0 : index
    %c0_28 = arith.constant 0 : index
    %42 = vector.load %arg11[%c0_27, %c0_28] : memref<8x640xf32, #tpu.memory_space<vmem>>, vector<8x640xf32>
    tpu.vector_store %arg11[%c0_27, %c0_28], %41 {strides = array<i32>} : memref<8x640xf32, #tpu.memory_space<vmem>>, vector<8x640xf32>,
    %c0_29 = arith.constant 0 : index
    %c0_30 = arith.constant 0 : index
    %43 = vector.load %arg12[%c0_29, %c0_30] : memref<8x80xf32, #tpu.memory_space<vmem>>, vector<8x80xf32>
    tpu.vector_store %arg12[%c0_29, %c0_30], %13 {strides = array<i32>} : memref<8x80xf32, #tpu.memory_space<vmem>>, vector<8x80xf32>,
    return
  }
  func.func @transform_0(%arg0: i32) -> (i32, i32) {
    %c0_i32 = arith.constant 0 : i32
    %c0_i32_0 = arith.constant 0 : i32
    return %arg0, %c0_i32 : i32, i32
  }
  func.func @transform_1(%arg0: i32) -> (i32, i32) {
    %c0_i32 = arith.constant 0 : i32
    %c0_i32_0 = arith.constant 0 : i32
    return %arg0, %c0_i32 : i32, i32
  }
  func.func @transform_2(%arg0: i32) -> (i32, i32) {
    %c0_i32 = arith.constant 0 : i32
    %c0_i32_0 = arith.constant 0 : i32
    %c0_i32_1 = arith.constant 0 : i32
    return %c0_i32, %c0_i32_0 : i32, i32
  }
  func.func @transform_3(%arg0: i32) -> (i32, i32) {
    %c0_i32 = arith.constant 0 : i32
    %c0_i32_0 = arith.constant 0 : i32
    %c0_i32_1 = arith.constant 0 : i32
    return %c0_i32, %c0_i32_0 : i32, i32
  }
  func.func @transform_4(%arg0: i32) -> (i32, i32) {
    %c0_i32 = arith.constant 0 : i32
    %c0_i32_0 = arith.constant 0 : i32
    %c0_i32_1 = arith.constant 0 : i32
    return %c0_i32, %c0_i32_0 : i32, i32
  }
  func.func @transform_5(%arg0: i32) -> (i32, i32) {
    %c0_i32 = arith.constant 0 : i32
    %c0_i32_0 = arith.constant 0 : i32
    %c0_i32_1 = arith.constant 0 : i32
    return %c0_i32, %c0_i32_0 : i32, i32
  }
  func.func @transform_6(%arg0: i32) -> (i32, i32) {
    %c0_i32 = arith.constant 0 : i32
    %c0_i32_0 = arith.constant 0 : i32
    %c0_i32_1 = arith.constant 0 : i32
    return %c0_i32, %c0_i32_0 : i32, i32
  }
  func.func @transform_7(%arg0: i32) -> (i32, i32) {
    %c0_i32 = arith.constant 0 : i32
    %c0_i32_0 = arith.constant 0 : i32
    %c0_i32_1 = arith.constant 0 : i32
    return %c0_i32, %c0_i32_0 : i32, i32
  }
  func.func @transform_8(%arg0: i32) -> (i32, i32) {
    %c0_i32 = arith.constant 0 : i32
    %c0_i32_0 = arith.constant 0 : i32
    %c0_i32_1 = arith.constant 0 : i32
    return %c0_i32, %c0_i32_0 : i32, i32
  }
  func.func @transform_9(%arg0: i32) -> (i32, i32) {
    %c0_i32 = arith.constant 0 : i32
    %c0_i32_0 = arith.constant 0 : i32
    %c0_i32_1 = arith.constant 0 : i32
    return %c0_i32, %c0_i32_0 : i32, i32
  }
  func.func @transform_10(%arg0: i32) -> (i32, i32) {
    %c0_i32 = arith.constant 0 : i32
    %c0_i32_0 = arith.constant 0 : i32
    return %arg0, %c0_i32 : i32, i32
  }
  func.func @transform_11(%arg0: i32) -> (i32, i32) {
    %c0_i32 = arith.constant 0 : i32
    %c0_i32_0 = arith.constant 0 : i32
    return %arg0, %c0_i32 : i32, i32
  }
}

</mosaic_0001>

<bundles_post_ra>
// kernel: tpu_custom_call.1
= control target key start
LH: loop header
LB: loop body
LE: loop exit
PB: predicated region body
PF: predicated region fallthrough
CT: control target
= control target key end

     0   :  { %17 = vsyncpa [#allocation3], 0  ;;  %s4987_s0 = inlined_call_operand.vmem [shape: bf16[8,640], index: 0, kind: input, shape index: {}]   ;;  %s4988_s1 = inlined_call_operand.vmem [shape: f32[8,40], index: 1, kind: input, shape index: {}]   ;;  %s4989_s2 = inlined_call_operand.vmem [shape: bf16[640,400], index: 2, kind: input, shape index: {}]   ;;  %s4990_s3 = inlined_call_operand.vmem [shape: f32[1,400], index: 3, kind: input, shape index: {}]   ;;  %s4991_s4 = inlined_call_operand.vmem [shape: bf16[400,80], index: 4, kind: input, shape index: {}]   ;;  %s4992_s5 = inlined_call_operand.vmem [shape: f32[1,80], index: 5, kind: input, shape index: {}]   ;;  %s4993_s6 = inlined_call_operand.vmem [shape: bf16[40,400], index: 6, kind: input, shape index: {}]   ;;  %s4994_s7 = inlined_call_operand.vmem [shape: f32[1,400], index: 7, kind: input, shape index: {}]   ;;  %s4995_s8 = inlined_call_operand.vmem [shape: bf16[400,640], index: 8, kind: input, shape index: {}]   ;;  %s4996_s9 = inlined_call_operand.vmem [shape: f32[1,640], index: 9, kind: input, shape index: {}]   ;;  %s4997_s10 = inlined_call_operand.hbm [shape: f32[8,640], index: 10, kind: output, shape index: {0}]   ;;  %s4998_s11 = inlined_call_operand.hbm [shape: f32[8,80], index: 11, kind: output, shape index: {1}]  }
   0x1   :  { %v3306_v0 = vld [vmem:[%s4989_s2 + $0xe4] ss:$16 sps:$4 sm:$0xff]   ;;  %v3310_v2 = vld [vmem:[%s4989_s2 + $0xe0] ss:$16 sps:$4 sm:$0xff]   ;;  %v41_v48 = vld [vmem:[%s4987_s0 + $0x8] sm:$0xff] }
   0x2   :  { %v3308_v1 = vld [vmem:[%s4989_s2 + $0x2e4] ss:$16 sps:$4 sm:$0xff]   ;;  %1043 = vmatprep.subr.bf16.mxu0 %v3306_v0  ;;  %v3311_v3 = vld [vmem:[%s4989_s2 + $0x2e0] ss:$16 sps:$4 sm:$0xff]   ;;  %v4049_v51 = vcombine.high %v41_v48, %v41_v48 }
   0x3   :  { %1084 = vmatprep.subr.bf16.mxu1 %v3308_v1  ;;  %v3312_v4 = vld [vmem:[%s4989_s2 + $0xc4] ss:$16 sps:$4 sm:$0xff]   ;;  %1044 = vmatpush1.bf16.msra.mxu0 %v3310_v2  ;;  %v3316_v6 = vld [vmem:[%s4989_s2 + $0xc0] ss:$16 sps:$4 sm:$0xff]  }
   0x4   :  { %1085 = vmatpush1.bf16.msra.mxu1 %v3311_v3  ;;  %v3314_v5 = vld [vmem:[%s4989_s2 + $0x2c4] ss:$16 sps:$4 sm:$0xff]   ;;  %1045 = vmatprep.subr.bf16.mxu0 %v3312_v4  ;;  %v3317_v7 = vld [vmem:[%s4989_s2 + $0x2c0] ss:$16 sps:$4 sm:$0xff]  }
   0x5   :  { %1086 = vmatprep.subr.bf16.mxu1 %v3314_v5  ;;  %v3318_v8 = vld [vmem:[%s4989_s2 + $0xa4] ss:$16 sps:$4 sm:$0xff]   ;;  %v3322_v10 = vld [vmem:[%s4989_s2 + $0xa0] ss:$16 sps:$4 sm:$0xff]   ;;  %1116 = vmatprep.mubr.bf16.mxu1 %v4049_v51  ;;  %v3411_v5 = vld [vmem:[%s4989_s2 + $0xec] ss:$16 sps:$4 sm:$0xff]  }
   0x6   :  { %v3320_v9 = vld [vmem:[%s4989_s2 + $0x2a4] ss:$16 sps:$4 sm:$0xff]   ;;  %v3323_v11 = vld [vmem:[%s4989_s2 + $0x2a0] ss:$16 sps:$4 sm:$0xff]  }
   0x7   :  { %1046 = vmatpush1.bf16.msra.mxu0 %v3316_v6  ;;  %v3324_v12 = vld [vmem:[%s4989_s2 + $0x84] ss:$16 sps:$4 sm:$0xff]   ;;  %v3328_v14 = vld [vmem:[%s4989_s2 + $0x80] ss:$16 sps:$4 sm:$0xff]  }
   0x8   :  { %1087 = vmatpush1.bf16.msra.mxu1 %v3317_v7  ;;  %1047 = vmatprep.subr.bf16.mxu0 %v3318_v8  ;;  %v3326_v13 = vld [vmem:[%s4989_s2 + $0x284] ss:$16 sps:$4 sm:$0xff]   ;;  %v3329_v15 = vld [vmem:[%s4989_s2 + $0x280] ss:$16 sps:$4 sm:$0xff]   ;;  %v4109_v7 = vcombine.low %v41_v48, %v41_v48  ;;  %v3469_v48 = vld [vmem:[%s4989_s2 + $0x1ac] ss:$16 sps:$4 sm:$0xff]  }
   0x9   :  { %1088 = vmatprep.subr.bf16.mxu1 %v3320_v9  ;;  %v3330_v16 = vld [vmem:[%s4989_s2 + $0x64] ss:$16 sps:$4 sm:$0xff]   ;;  %v3334_v18 = vld [vmem:[%s4989_s2 + $0x60] ss:$16 sps:$4 sm:$0xff]   ;;  %v3409_v9 = vld [vmem:[%s4989_s2 + $0xe8] ss:$16 sps:$4 sm:$0xff]  }
   0xa   :  { %v3332_v17 = vld [vmem:[%s4989_s2 + $0x264] ss:$16 sps:$4 sm:$0xff]   ;;  %v3335_v19 = vld [vmem:[%s4989_s2 + $0x260] ss:$16 sps:$4 sm:$0xff]  }
   0xb   :  { %1048 = vmatpush1.bf16.msra.mxu0 %v3322_v10  ;;  %v3336_v20 = vld [vmem:[%s4989_s2 + $0x44] ss:$16 sps:$4 sm:$0xff]   ;;  %v3340_v22 = vld [vmem:[%s4989_s2 + $0x40] ss:$16 sps:$4 sm:$0xff]  }
   0xc   :  { %1089 = vmatpush1.bf16.msra.mxu1 %v3323_v11  ;;  %1049 = vmatprep.subr.bf16.mxu0 %v3324_v12  ;;  %v3338_v21 = vld [vmem:[%s4989_s2 + $0x244] ss:$16 sps:$4 sm:$0xff]   ;;  %v3341_v23 = vld [vmem:[%s4989_s2 + $0x240] ss:$16 sps:$4 sm:$0xff]   ;;  %v3417_v11 = vld [vmem:[%s4989_s2 + $0xcc] ss:$16 sps:$4 sm:$0xff]  }
   0xd   :  { %1090 = vmatprep.subr.bf16.mxu1 %v3326_v13  ;;  %v3342_v24 = vld [vmem:[%s4989_s2 + $0x24] ss:$16 sps:$4 sm:$0xff]   ;;  %v3346_v26 = vld [vmem:[%s4989_s2 + $0x20] ss:$16 sps:$4 sm:$0xff]   ;;  %v3415_v13 = vld [vmem:[%s4989_s2 + $0xc8] ss:$16 sps:$4 sm:$0xff]  }
   0xe   :  { %v3344_v25 = vld [vmem:[%s4989_s2 + $0x224] ss:$16 sps:$4 sm:$0xff]   ;;  %v3347_v27 = vld [vmem:[%s4989_s2 + $0x220] ss:$16 sps:$4 sm:$0xff]  }
   0xf   :  { %1050 = vmatpush1.bf16.msra.mxu0 %v3328_v14  ;;  %v3348_v28 = vld [vmem:[%s4989_s2 + $0x4] ss:$16 sps:$4 sm:$0xff]   ;;  %v3352_v30 = vld [vmem:[%s4989_s2] ss:$16 sps:$4 sm:$0xff]  }
  0x10   :  { %1091 = vmatpush1.bf16.msra.mxu1 %v3329_v15  ;;  %1051 = vmatprep.subr.bf16.mxu0 %v3330_v16  ;;  %v3350_v29 = vld [vmem:[%s4989_s2 + $0x204] ss:$16 sps:$4 sm:$0xff]   ;;  %v3353_v31 = vld [vmem:[%s4989_s2 + $0x200] ss:$16 sps:$4 sm:$0xff]   ;;  %v3423_v15 = vld [vmem:[%s4989_s2 + $0xac] ss:$16 sps:$4 sm:$0xff]  }
  0x11   :  { %1092 = vmatprep.subr.bf16.mxu1 %v3332_v17  ;;  %v3354_v32 = vld [vmem:[%s4989_s2 + $0x1e4] ss:$16 sps:$4 sm:$0xff]   ;;  %v3358_v34 = vld [vmem:[%s4989_s2 + $0x1e0] ss:$16 sps:$4 sm:$0xff]   ;;  %v3833_v16 = vmov 0  }
  0x12   :  { %v3356_v33 = vld [vmem:[%s4989_s2 + $0x3e4] ss:$16 sps:$4 sm:$0xff]   ;;  %v3359_v35 = vld [vmem:[%s4989_s2 + $0x3e0] ss:$16 sps:$4 sm:$0xff]  }
  0x13   :  { %1052 = vmatpush1.bf16.msra.mxu0 %v3334_v18  ;;  %v3360_v36 = vld [vmem:[%s4989_s2 + $0x1c4] ss:$16 sps:$4 sm:$0xff]   ;;  %v3364_v38 = vld [vmem:[%s4989_s2 + $0x1c0] ss:$16 sps:$4 sm:$0xff]   ;;  %v3421_v18 = vld [vmem:[%s4989_s2 + $0xa8] ss:$16 sps:$4 sm:$0xff]  }
  0x14   :  { %1093 = vmatpush1.bf16.msra.mxu1 %v3335_v19  ;;  %1053 = vmatprep.subr.bf16.mxu0 %v3336_v20  ;;  %v3362_v37 = vld [vmem:[%s4989_s2 + $0x3c4] ss:$16 sps:$4 sm:$0xff]   ;;  %v3365_v39 = vld [vmem:[%s4989_s2 + $0x3c0] ss:$16 sps:$4 sm:$0xff]   ;;  %v3429_v20 = vld [vmem:[%s4989_s2 + $0x8c] ss:$16 sps:$4 sm:$0xff]  }
  0x15   :  { %1094 = vmatprep.subr.bf16.mxu1 %v3338_v21  ;;  %v3366_v40 = vld [vmem:[%s4989_s2 + $0x1a4] ss:$16 sps:$4 sm:$0xff]   ;;  %v3370_v42 = vld [vmem:[%s4989_s2 + $0x1a0] ss:$16 sps:$4 sm:$0xff]  }
  0x16   :  { %v3368_v41 = vld [vmem:[%s4989_s2 + $0x3a4] ss:$16 sps:$4 sm:$0xff]   ;;  %v3371_v43 = vld [vmem:[%s4989_s2 + $0x3a0] ss:$16 sps:$4 sm:$0xff]  }
  0x17   :  { %1054 = vmatpush1.bf16.msra.mxu0 %v3340_v22  ;;  %v3372_v44 = vld [vmem:[%s4989_s2 + $0x184] ss:$16 sps:$4 sm:$0xff]   ;;  %v3376_v49 = vld [vmem:[%s4989_s2 + $0x180] ss:$16 sps:$4 sm:$0xff]   ;;  %v3427_v22 = vld [vmem:[%s4989_s2 + $0x88] ss:$16 sps:$4 sm:$0xff]  }
  0x18   :  { %1095 = vmatpush1.bf16.msra.mxu1 %v3341_v23  ;;  %1055 = vmatprep.subr.bf16.mxu0 %v3342_v24  ;;  %v3374_v45 = vld [vmem:[%s4989_s2 + $0x384] ss:$16 sps:$4 sm:$0xff]   ;;  %v3377_v50 = vld [vmem:[%s4989_s2 + $0x380] ss:$16 sps:$4 sm:$0xff]   ;;  %v3435_v24 = vld [vmem:[%s4989_s2 + $0x6c] ss:$16 sps:$4 sm:$0xff]  }
  0x19   :  { %1096 = vmatprep.subr.bf16.mxu1 %v3344_v25  ;;  %v40_v46 = vld [vmem:[%s4987_s0] sm:$0xff] }
  0x1a   :  { %v4038_v47 = vcombine.high %v40_v46, %v40_v46  ;;  %v3378_v52 = vld [vmem:[%s4989_s2 + $0x164] ss:$16 sps:$4 sm:$0xff]   ;;  %v3382_v54 = vld [vmem:[%s4989_s2 + $0x160] ss:$16 sps:$4 sm:$0xff]   ;;  %v4107_v6 = vcombine.low %v40_v46, %v40_v46  ;;  %v3461_v46 = vld [vmem:[%s4989_s2 + $0x1c8] ss:$16 sps:$4 sm:$0xff]  }
  0x1b   :  { %1056 = vmatpush1.bf16.msra.mxu0 %v3346_v26  ;;  %v3380_v53 = vld [vmem:[%s4989_s2 + $0x364] ss:$16 sps:$4 sm:$0xff]   ;;  %v3383_v55 = vld [vmem:[%s4989_s2 + $0x360] ss:$16 sps:$4 sm:$0xff]   ;;  %v3433_v26 = vld [vmem:[%s4989_s2 + $0x68] ss:$16 sps:$4 sm:$0xff]  }
  0x1c   :  { %1097 = vmatpush1.bf16.msra.mxu1 %v3347_v27  ;;  %1057 = vmatprep.subr.bf16.mxu0 %v3348_v28  ;;  %v3384_v56 = vld [vmem:[%s4989_s2 + $0x144] ss:$16 sps:$4 sm:$0xff]   ;;  %v3388_v58 = vld [vmem:[%s4989_s2 + $0x140] ss:$16 sps:$4 sm:$0xff]   ;;  %v3441_v28 = vld [vmem:[%s4989_s2 + $0x4c] ss:$16 sps:$4 sm:$0xff]  }
  0x1d   :  { %1098 = vmatprep.subr.bf16.mxu1 %v3350_v29  ;;  %1075 = vmatprep.mubr.bf16.mxu0 %v4038_v47  ;;  %v3386_v57 = vld [vmem:[%s4989_s2 + $0x344] ss:$16 sps:$4 sm:$0xff]   ;;  %v3389_v59 = vld [vmem:[%s4989_s2 + $0x340] ss:$16 sps:$4 sm:$0xff]  }
  0x1e   :  { %v3390_v60 = vld [vmem:[%s4989_s2 + $0x124] ss:$16 sps:$4 sm:$0xff]   ;;  %v3394_v62 = vld [vmem:[%s4989_s2 + $0x120] ss:$16 sps:$4 sm:$0xff]  }
  0x1f   :  { %1058 = vmatpush1.bf16.msra.mxu0 %v3352_v30  ;;  %v3392_v61 = vld [vmem:[%s4989_s2 + $0x324] ss:$16 sps:$4 sm:$0xff]   ;;  %v3395_v63 = vld [vmem:[%s4989_s2 + $0x320] ss:$16 sps:$4 sm:$0xff]   ;;  %v3439_v30 = vld [vmem:[%s4989_s2 + $0x48] ss:$16 sps:$4 sm:$0xff]  }
  0x20   :  { %1099 = vmatpush1.bf16.msra.mxu1 %v3353_v31  ;;  %1059 = vmatprep.subr.bf16.mxu0 %v3354_v32  ;;  %v3396_v0 = vld [vmem:[%s4989_s2 + $0x104] ss:$16 sps:$4 sm:$0xff]   ;;  %v3400_v2 = vld [vmem:[%s4989_s2 + $0x100] ss:$16 sps:$4 sm:$0xff]   ;;  %v3447_v32 = vld [vmem:[%s4989_s2 + $0x2c] ss:$16 sps:$4 sm:$0xff]  }
  0x21   :  { %1100 = vmatprep.subr.bf16.mxu1 %v3356_v33  ;;  %v3398_v1 = vld [vmem:[%s4989_s2 + $0x304] ss:$16 sps:$4 sm:$0xff]   ;;  %v3401_v3 = vld [vmem:[%s4989_s2 + $0x300] ss:$16 sps:$4 sm:$0xff]  }
  0x22   :  { %v3408_v4 = vld [vmem:[%s4989_s2 + $0x4e4] ss:$16 sps:$4 sm:$0xff]   ;;  %v3406_v8 = vld [vmem:[%s4989_s2 + $0x4e0] ss:$16 sps:$4 sm:$0xff]  }
  0x23   :  { %1060 = vmatpush2.bf16.msra.mxu0 %v3358_v34  ;;  %v3414_v10 = vld [vmem:[%s4989_s2 + $0x4c4] ss:$16 sps:$4 sm:$0xff]   ;;  %v3412_v12 = vld [vmem:[%s4989_s2 + $0x4c0] ss:$16 sps:$4 sm:$0xff]   ;;  %v3445_v34 = vld [vmem:[%s4989_s2 + $0x28] ss:$16 sps:$4 sm:$0xff]  }
  0x24   :  { %1101 = vmatpush2.bf16.msra.mxu1 %v3359_v35  ;;  %1061 = vmatprep.subr.bf16.mxu0 %v3360_v36  ;;  %v3420_v14 = vld [vmem:[%s4989_s2 + $0x4a4] ss:$16 sps:$4 sm:$0xff]   ;;  %v3418_v17 = vld [vmem:[%s4989_s2 + $0x4a0] ss:$16 sps:$4 sm:$0xff]   ;;  %v3453_v36 = vld [vmem:[%s4989_s2 + $0xc] ss:$16 sps:$4 sm:$0xff]  }
  0x25   :  { %1102 = vmatprep.subr.bf16.mxu1 %v3362_v37  ;;  %v3426_v19 = vld [vmem:[%s4989_s2 + $0x484] ss:$16 sps:$4 sm:$0xff]   ;;  %v3424_v21 = vld [vmem:[%s4989_s2 + $0x480] ss:$16 sps:$4 sm:$0xff]  }
  0x26   :  { %v3432_v23 = vld [vmem:[%s4989_s2 + $0x464] ss:$16 sps:$4 sm:$0xff]   ;;  %v3430_v25 = vld [vmem:[%s4989_s2 + $0x460] ss:$16 sps:$4 sm:$0xff]  }
  0x27   :  { %1062 = vmatpush2.bf16.msra.mxu0 %v3364_v38  ;;  %v3438_v27 = vld [vmem:[%s4989_s2 + $0x444] ss:$16 sps:$4 sm:$0xff]   ;;  %v3436_v29 = vld [vmem:[%s4989_s2 + $0x440] ss:$16 sps:$4 sm:$0xff]   ;;  %v3451_v38 = vld [vmem:[%s4989_s2 + $0x8] ss:$16 sps:$4 sm:$0xff]  }
  0x28   :  { %1103 = vmatpush2.bf16.msra.mxu1 %v3365_v39  ;;  %1063 = vmatprep.subr.bf16.mxu0 %v3366_v40  ;;  %v3444_v31 = vld [vmem:[%s4989_s2 + $0x424] ss:$16 sps:$4 sm:$0xff]   ;;  %v3442_v33 = vld [vmem:[%s4989_s2 + $0x420] ss:$16 sps:$4 sm:$0xff]   ;;  %v3457_v39 = vld [vmem:[%s4989_s2 + $0x1ec] ss:$16 sps:$4 sm:$0xff]  }
  0x29   :  { %1104 = vmatprep.subr.bf16.mxu1 %v3368_v41  ;;  %v3450_v35 = vld [vmem:[%s4989_s2 + $0x404] ss:$16 sps:$4 sm:$0xff]   ;;  %v3448_v37 = vld [vmem:[%s4989_s2 + $0x400] ss:$16 sps:$4 sm:$0xff]   ;;  %v3460_v40 = vld [vmem:[%s4989_s2 + $0x2ec] ss:$16 sps:$4 sm:$0xff]  }
  0x2a   :  { %v4214_v41 = vld [vmem:[%s4987_s0 + $0x10] ss:$0 sps:$4 sm:$0xff]  }
  0x2b   :  { %1064 = vmatpush2.bf16.msra.mxu0 %v3370_v42  ;;  %v3455_v42 = vld [vmem:[%s4989_s2 + $0x1e8] ss:$16 sps:$4 sm:$0xff]  }
  0x2c   :  { %1105 = vmatpush2.bf16.msra.mxu1 %v3371_v43  ;;  %1065 = vmatprep.subr.bf16.mxu0 %v3372_v44  ;;  %v3458_v43 = vld [vmem:[%s4989_s2 + $0x2e8] ss:$16 sps:$4 sm:$0xff]   ;;  %v3463_v44 = vld [vmem:[%s4989_s2 + $0x1cc] ss:$16 sps:$4 sm:$0xff]  }
  0x2d   :  { %1106 = vmatprep.subr.bf16.mxu1 %v3374_v45  ;;  %v3466_v45 = vld [vmem:[%s4989_s2 + $0x2cc] ss:$16 sps:$4 sm:$0xff]  }
  0x2f   :  { %1066 = vmatpush2.bf16.msra.mxu0 %v3376_v49  ;;  %v3472_v49 = vld [vmem:[%s4989_s2 + $0x2ac] ss:$16 sps:$4 sm:$0xff]  }
  0x30   :  { %1107 = vmatpush2.bf16.msra.mxu1 %v3377_v50  ;;  %1067 = vmatprep.subr.bf16.mxu0 %v3378_v52  ;;  %v3467_v50 = vld [vmem:[%s4989_s2 + $0x1a8] ss:$16 sps:$4 sm:$0xff]  }
  0x31   :  { %1108 = vmatprep.subr.bf16.mxu1 %v3380_v53  ;;  %v3470_v52 = vld [vmem:[%s4989_s2 + $0x2a8] ss:$16 sps:$4 sm:$0xff]   ;;  %v3475_v53 = vld [vmem:[%s4989_s2 + $0x18c] ss:$16 sps:$4 sm:$0xff]  }
  0x33   :  { %1068 = vmatpush2.bf16.msra.mxu0 %v3382_v54  ;;  %v3473_v54 = vld [vmem:[%s4989_s2 + $0x188] ss:$16 sps:$4 sm:$0xff]  }
  0x34   :  { %1109 = vmatpush2.bf16.msra.mxu1 %v3383_v55  ;;  %1069 = vmatprep.subr.bf16.mxu0 %v3384_v56  ;;  %v3476_v55 = vld [vmem:[%s4989_s2 + $0x288] ss:$16 sps:$4 sm:$0xff]   ;;  %v3481_v56 = vld [vmem:[%s4989_s2 + $0x16c] ss:$16 sps:$4 sm:$0xff]  }
  0x35   :  { %1110 = vmatprep.subr.bf16.mxu1 %v3386_v57  ;;  %v3484_v57 = vld [vmem:[%s4989_s2 + $0x26c] ss:$16 sps:$4 sm:$0xff]  }
  0x37   :  { %1070 = vmatpush2.bf16.msra.mxu0 %v3388_v58  ;;  %v3479_v58 = vld [vmem:[%s4989_s2 + $0x168] ss:$16 sps:$4 sm:$0xff]  }
  0x38   :  { %1111 = vmatpush2.bf16.msra.mxu1 %v3389_v59  ;;  %1071 = vmatprep.subr.bf16.mxu0 %v3390_v60  ;;  %v3482_v59 = vld [vmem:[%s4989_s2 + $0x268] ss:$16 sps:$4 sm:$0xff]   ;;  %v3487_v60 = vld [vmem:[%s4989_s2 + $0x14c] ss:$16 sps:$4 sm:$0xff]  }
  0x39   :  { %1112 = vmatprep.subr.bf16.mxu1 %v3392_v61  ;;  %v3490_v61 = vld [vmem:[%s4989_s2 + $0x24c] ss:$16 sps:$4 sm:$0xff]  }
  0x3b   :  { %1072 = vmatpush2.bf16.msra.mxu0 %v3394_v62  ;;  %v3485_v62 = vld [vmem:[%s4989_s2 + $0x148] ss:$16 sps:$4 sm:$0xff]  }
  0x3c   :  { %1113 = vmatpush2.bf16.msra.mxu1 %v3395_v63  ;;  %1073 = vmatprep.subr.bf16.mxu0 %v3396_v0  ;;  %v3488_v63 = vld [vmem:[%s4989_s2 + $0x248] ss:$16 sps:$4 sm:$0xff]   ;;  %v3493_v0 = vld [vmem:[%s4989_s2 + $0x12c] ss:$16 sps:$4 sm:$0xff]  }
  0x3d   :  { %1114 = vmatprep.subr.bf16.mxu1 %v3398_v1  ;;  %v3496_v1 = vld [vmem:[%s4989_s2 + $0x22c] ss:$16 sps:$4 sm:$0xff]  }
  0x3f   :  { %1074 = vmatpush2.bf16.msra.mxu0 %v3400_v2  ;;  %v3491_v2 = vld [vmem:[%s4989_s2 + $0x128] ss:$16 sps:$4 sm:$0xff]  }
  0x40   :  { %1115 = vmatpush2.bf16.msra.mxu1 %v3401_v3  ;;  %1125 = vmatprep.subr.bf16.mxu0 %v3408_v4  ;;  %v3494_v3 = vld [vmem:[%s4989_s2 + $0x228] ss:$16 sps:$4 sm:$0xff]   ;;  %v3499_v4 = vld [vmem:[%s4989_s2 + $0x10c] ss:$16 sps:$4 sm:$0xff]  }
  0x41   :  { %1166 = vmatprep.subr.bf16.mxu1 %v3411_v5  ;;  %v3502_v5 = vld [vmem:[%s4989_s2 + $0x20c] ss:$16 sps:$4 sm:$0xff]  }
  0x42   :  { %1076 = vmatmul.mubr.bf16.vlgmr.msra.gmra.mxu0 %v4107_v6 }
  0x43   :  { %1117 = vmatmul.mubr.bf16.vlgmr.msra.gmra.mxu1 %v4109_v7  ;;  %1126 = vmatpush1.bf16.msra.mxu0 %v3406_v8  ;;  %v3497_v8 = vld [vmem:[%s4989_s2 + $0x108] ss:$16 sps:$4 sm:$0xff]  }
  0x44   :  { %1167 = vmatpush1.bf16.msra.mxu1 %v3409_v9  ;;  %1127 = vmatprep.subr.bf16.mxu0 %v3414_v10  ;;  %v3500_v9 = vld [vmem:[%s4989_s2 + $0x208] ss:$16 sps:$4 sm:$0xff]   ;;  %v3505_v10 = vld [vmem:[%s4989_s2 + $0x3ec] ss:$16 sps:$4 sm:$0xff]  }
  0x45   :  { %1168 = vmatprep.subr.bf16.mxu1 %v3417_v11  ;;  %1157 = vmatprep.mubr.bf16.mxu0 %v3833_v16  ;;  %v3508_v11 = vld [vmem:[%s4989_s2 + $0x4ec] ss:$16 sps:$4 sm:$0xff]  }
  0x46   :  { %1198 = vmatprep.mubr.bf16.mxu1 %v4038_v47  ;;  %v3464_v47 = vld [vmem:[%s4989_s2 + $0x2c8] ss:$16 sps:$4 sm:$0xff]  }
  0x47   :  { %1128 = vmatpush1.bf16.msra.mxu0 %v3412_v12  ;;  %v3503_v12 = vld [vmem:[%s4989_s2 + $0x3e8] ss:$16 sps:$4 sm:$0xff]  }
  0x48   :  { %1169 = vmatpush1.bf16.msra.mxu1 %v3415_v13  ;;  %1129 = vmatprep.subr.bf16.mxu0 %v3420_v14  ;;  %v3506_v13 = vld [vmem:[%s4989_s2 + $0x4e8] ss:$16 sps:$4 sm:$0xff]   ;;  %v3511_v14 = vld [vmem:[%s4989_s2 + $0x3cc] ss:$16 sps:$4 sm:$0xff]  }
  0x49   :  { %1170 = vmatprep.subr.bf16.mxu1 %v3423_v15  ;;  %v3514_v15 = vld [vmem:[%s4989_s2 + $0x4cc] ss:$16 sps:$4 sm:$0xff]  }
  0x4b   :  { %1130 = vmatpush1.bf16.msra.mxu0 %v3418_v17  ;;  %v3509_v17 = vld [vmem:[%s4989_s2 + $0x3c8] ss:$16 sps:$4 sm:$0xff]  }
  0x4c   :  { %1171 = vmatpush1.bf16.msra.mxu1 %v3421_v18  ;;  %1131 = vmatprep.subr.bf16.mxu0 %v3426_v19  ;;  %v3512_v18 = vld [vmem:[%s4989_s2 + $0x4c8] ss:$16 sps:$4 sm:$0xff]   ;;  %v3517_v19 = vld [vmem:[%s4989_s2 + $0x3ac] ss:$16 sps:$4 sm:$0xff]  }
  0x4d   :  { %1172 = vmatprep.subr.bf16.mxu1 %v3429_v20  ;;  %v3520_v20 = vld [vmem:[%s4989_s2 + $0x4ac] ss:$16 sps:$4 sm:$0xff]  }
  0x4f   :  { %1132 = vmatpush1.bf16.msra.mxu0 %v3424_v21  ;;  %v3515_v21 = vld [vmem:[%s4989_s2 + $0x3a8] ss:$16 sps:$4 sm:$0xff]  }
  0x50   :  { %1173 = vmatpush1.bf16.msra.mxu1 %v3427_v22  ;;  %1133 = vmatprep.subr.bf16.mxu0 %v3432_v23  ;;  %v3523_v22 = vld [vmem:[%s4989_s2 + $0x38c] ss:$16 sps:$4 sm:$0xff]  }
  0x51   :  { %1174 = vmatprep.subr.bf16.mxu1 %v3435_v24  ;;  %v3526_v23 = vld [vmem:[%s4989_s2 + $0x48c] ss:$16 sps:$4 sm:$0xff]   ;;  %v3521_v24 = vld [vmem:[%s4989_s2 + $0x388] ss:$16 sps:$4 sm:$0xff]  }
  0x53   :  { %1134 = vmatpush1.bf16.msra.mxu0 %v3430_v25  ;;  %v3524_v25 = vld [vmem:[%s4989_s2 + $0x488] ss:$16 sps:$4 sm:$0xff]  }
  0x54   :  { %1175 = vmatpush1.bf16.msra.mxu1 %v3433_v26  ;;  %1135 = vmatprep.subr.bf16.mxu0 %v3438_v27  ;;  %v3529_v26 = vld [vmem:[%s4989_s2 + $0x36c] ss:$16 sps:$4 sm:$0xff]  }
  0x55   :  { %1176 = vmatprep.subr.bf16.mxu1 %v3441_v28  ;;  %v3532_v27 = vld [vmem:[%s4989_s2 + $0x46c] ss:$16 sps:$4 sm:$0xff]   ;;  %v3527_v28 = vld [vmem:[%s4989_s2 + $0x368] ss:$16 sps:$4 sm:$0xff]  }
  0x57   :  { %1136 = vmatpush1.bf16.msra.mxu0 %v3436_v29  ;;  %v3530_v29 = vld [vmem:[%s4989_s2 + $0x468] ss:$16 sps:$4 sm:$0xff]  }
  0x58   :  { %1177 = vmatpush1.bf16.msra.mxu1 %v3439_v30  ;;  %1137 = vmatprep.subr.bf16.mxu0 %v3444_v31  ;;  %v3535_v30 = vld [vmem:[%s4989_s2 + $0x34c] ss:$16 sps:$4 sm:$0xff]  }
  0x59   :  { %1178 = vmatprep.subr.bf16.mxu1 %v3447_v32  ;;  %v3538_v31 = vld [vmem:[%s4989_s2 + $0x44c] ss:$16 sps:$4 sm:$0xff]   ;;  %v3533_v32 = vld [vmem:[%s4989_s2 + $0x348] ss:$16 sps:$4 sm:$0xff]  }
  0x5b   :  { %1138 = vmatpush1.bf16.msra.mxu0 %v3442_v33  ;;  %v3536_v33 = vld [vmem:[%s4989_s2 + $0x448] ss:$16 sps:$4 sm:$0xff]  }
  0x5c   :  { %1179 = vmatpush1.bf16.msra.mxu1 %v3445_v34  ;;  %1139 = vmatprep.subr.bf16.mxu0 %v3450_v35  ;;  %v3541_v34 = vld [vmem:[%s4989_s2 + $0x32c] ss:$16 sps:$4 sm:$0xff]  }
  0x5d   :  { %1180 = vmatprep.subr.bf16.mxu1 %v3453_v36  ;;  %v3544_v35 = vld [vmem:[%s4989_s2 + $0x42c] ss:$16 sps:$4 sm:$0xff]   ;;  %v3539_v36 = vld [vmem:[%s4989_s2 + $0x328] ss:$16 sps:$4 sm:$0xff]  }
  0x5f   :  { %1140 = vmatpush1.bf16.msra.mxu0 %v3448_v37  ;;  %v3542_v37 = vld [vmem:[%s4989_s2 + $0x428] ss:$16 sps:$4 sm:$0xff]  }
  0x60   :  { %1181 = vmatpush1.bf16.msra.mxu1 %v3451_v38  ;;  %1207 = vmatprep.subr.bf16.mxu0 %v3460_v40  ;;  %v3547_v38 = vld [vmem:[%s4989_s2 + $0x30c] ss:$16 sps:$4 sm:$0xff]   ;;  %v3545_v40 = vld [vmem:[%s4989_s2 + $0x308] ss:$16 sps:$4 sm:$0xff]  }
  0x61   :  { %1182 = vmatprep.subr.bf16.mxu1 %v3457_v39  ;;  %v3550_v39 = vld [vmem:[%s4989_s2 + $0x40c] ss:$16 sps:$4 sm:$0xff]  }
  0x62   :  { %1158 = vmatmul.mubr.bf16.vlgmr.msra.gmra.mxu0 %v4214_v41 }
  0x63   :  { %1208 = vmatpush1.bf16.msra.mxu0 %v3458_v43  ;;  %1239 = vmatprep.mubr.bf16.mxu0 %v4049_v51  ;;  %v3478_v51 = vld [vmem:[%s4989_s2 + $0x28c] ss:$16 sps:$4 sm:$0xff]  }
  0x64   :  { %1183 = vmatpush2.bf16.msra.mxu1 %v3455_v42  ;;  %1209 = vmatprep.subr.bf16.mxu0 %v3466_v45  ;;  %v3548_v42 = vld [vmem:[%s4989_s2 + $0x408] ss:$16 sps:$4 sm:$0xff]   ;;  %v3553_v45 = vld [vmem:[%s4991_s4 + $0x70] sm:$0xff]  }
  0x65   :  { %1184 = vmatprep.subr.bf16.mxu1 %v3463_v44  ;;  %v3551_v43 = vld [vmem:[%s4991_s4 + $0x78] sm:$0xff]  }
  0x66   :  { %v3552_v44 = vld [vmem:[%s4991_s4 + $0x38] sm:$0xff]  }
  0x67   :  { %1210 = vmatpush1.bf16.msra.mxu0 %v3464_v47  ;;  %v3555_v47 = vld [vmem:[%s4991_s4 + $0x68] sm:$0xff]  }
  0x68   :  { %1185 = vmatpush2.bf16.msra.mxu1 %v3461_v46  ;;  %1211 = vmatprep.subr.bf16.mxu0 %v3472_v49  ;;  %v3554_v46 = vld [vmem:[%s4991_s4 + $0x30] sm:$0xff]   ;;  %v3559_v49 = vld [vmem:[%s4991_s4 + $0x58] sm:$0xff]  }
  0x69   :  { %1186 = vmatprep.subr.bf16.mxu1 %v3469_v48  ;;  %v3556_v48 = vld [vmem:[%s4991_s4 + $0x28] sm:$0xff]  }
  0x6b   :  { %1212 = vmatpush1.bf16.msra.mxu0 %v3470_v52  ;;  %v3561_v52 = vld [vmem:[%s4991_s4 + $0x50] sm:$0xff]  }
  0x6c   :  { %1187 = vmatpush2.bf16.msra.mxu1 %v3467_v50  ;;  %1213 = vmatprep.subr.bf16.mxu0 %v3478_v51  ;;  %v3560_v50 = vld [vmem:[%s4991_s4 + $0x18] sm:$0xff]   ;;  %v3563_v51 = vld [vmem:[%s4991_s4 + $0x48] sm:$0xff]  }
  0x6d   :  { %1188 = vmatprep.subr.bf16.mxu1 %v3475_v53  ;;  %v3562_v53 = vld [vmem:[%s4991_s4 + $0x10] sm:$0xff]  }
  0x6f   :  { %1214 = vmatpush1.bf16.msra.mxu0 %v3476_v55 }
  0x70   :  { %1189 = vmatpush2.bf16.msra.mxu1 %v3473_v54  ;;  %1215 = vmatprep.subr.bf16.mxu0 %v3484_v57 }
  0x71   :  { %1190 = vmatprep.subr.bf16.mxu1 %v3481_v56 }
  0x73   :  { %1216 = vmatpush1.bf16.msra.mxu0 %v3482_v59 }
  0x74   :  { %1191 = vmatpush2.bf16.msra.mxu1 %v3479_v58  ;;  %1217 = vmatprep.subr.bf16.mxu0 %v3490_v61 }
  0x75   :  { %1192 = vmatprep.subr.bf16.mxu1 %v3487_v60 }
  0x77   :  { %1218 = vmatpush1.bf16.msra.mxu0 %v3488_v63 }
  0x78   :  { %1193 = vmatpush2.bf16.msra.mxu1 %v3485_v62  ;;  %1219 = vmatprep.subr.bf16.mxu0 %v3496_v1 }
  0x79   :  { %1194 = vmatprep.subr.bf16.mxu1 %v3493_v0 }
  0x7b   :  { %1220 = vmatpush1.bf16.msra.mxu0 %v3494_v3 }
  0x7c   :  { %1195 = vmatpush2.bf16.msra.mxu1 %v3491_v2  ;;  %1221 = vmatprep.subr.bf16.mxu0 %v3502_v5 }
  0x7d   :  { %1196 = vmatprep.subr.bf16.mxu1 %v3499_v4 }
  0x7f   :  { %1222 = vmatpush1.bf16.msra.mxu0 %v3500_v9 }
  0x80   :  { %1197 = vmatpush2.bf16.msra.mxu1 %v3497_v8  ;;  %1223 = vmatprep.subr.bf16.mxu0 %v3505_v10 }
  0x81   :  { %1248 = vmatprep.subr.bf16.mxu1 %v3508_v11 }
  0x83   :  { %1199 = vmatmul.mubr.bf16.vlgmr.msra.gmra.mxu1 %v4107_v6  ;;  %1224 = vmatpush2.bf16.msra.mxu0 %v3503_v12  ;;  %v3518_v6 = vld [vmem:[%s4989_s2 + $0x4a8] ss:$16 sps:$4 sm:$0xff]  }
  0x84   :  { %1249 = vmatpush1.bf16.msra.mxu1 %v3506_v13  ;;  %1225 = vmatprep.subr.bf16.mxu0 %v3511_v14 }
  0x85   :  { %1250 = vmatprep.subr.bf16.mxu1 %v3514_v15  ;;  %1280 = vmatprep.mubr.bf16.mxu1 %v3833_v16 }
  0x87   :  { %1226 = vmatpush2.bf16.msra.mxu0 %v3509_v17 }
  0x88   :  { %1251 = vmatpush1.bf16.msra.mxu1 %v3512_v18  ;;  %1227 = vmatprep.subr.bf16.mxu0 %v3517_v19 }
  0x89   :  { %1252 = vmatprep.subr.bf16.mxu1 %v3520_v20 }
  0x8b   :  { %1228 = vmatpush2.bf16.msra.mxu0 %v3515_v21 }
  0x8c   :  { %1253 = vmatpush1.bf16.msra.mxu1 %v3518_v6  ;;  %1229 = vmatprep.subr.bf16.mxu0 %v3523_v22 }
  0x8d   :  { %1254 = vmatprep.subr.bf16.mxu1 %v3526_v23 }
  0x8f   :  { %1230 = vmatpush2.bf16.msra.mxu0 %v3521_v24 }
  0x90   :  { %1255 = vmatpush1.bf16.msra.mxu1 %v3524_v25  ;;  %1231 = vmatprep.subr.bf16.mxu0 %v3529_v26 }
  0x91   :  { %1256 = vmatprep.subr.bf16.mxu1 %v3532_v27 }
  0x93   :  { %1232 = vmatpush2.bf16.msra.mxu0 %v3527_v28 }
  0x94   :  { %1257 = vmatpush1.bf16.msra.mxu1 %v3530_v29  ;;  %1233 = vmatprep.subr.bf16.mxu0 %v3535_v30 }
  0x95   :  { %1258 = vmatprep.subr.bf16.mxu1 %v3538_v31 }
  0x97   :  { %1234 = vmatpush2.bf16.msra.mxu0 %v3533_v32 }
  0x98   :  { %1259 = vmatpush1.bf16.msra.mxu1 %v3536_v33  ;;  %1235 = vmatprep.subr.bf16.mxu0 %v3541_v34 }
  0x99   :  { %1260 = vmatprep.subr.bf16.mxu1 %v3544_v35 }
  0x9b   :  { %1236 = vmatpush2.bf16.msra.mxu0 %v3539_v36 }
  0x9c   :  { %1261 = vmatpush1.bf16.msra.mxu1 %v3542_v37  ;;  %1237 = vmatprep.subr.bf16.mxu0 %v3547_v38 }
  0x9d   :  { %1262 = vmatprep.subr.bf16.mxu1 %v3550_v39 }
  0x9f   :  { %1238 = vmatpush2.bf16.msra.mxu0 %v3545_v40 }
  0xa0   :  { %1263 = vmatpush1.bf16.msra.mxu1 %v3548_v42  ;;  %3258 = vmatprep.subr.bf16.mxu0 %v3551_v43 }
  0xa1   :  { %1548 = vmatprep.subr.bf16.mxu1 %v3833_v16 }
  0xa2   :  { %1240 = vmatmul.mubr.bf16.vlgmr.msra.gmra.mxu0 %v4109_v7  ;;  %v3557_v7 = vld [vmem:[%s4991_s4 + $0x60] sm:$0xff]  }
  0xa3   :  { %1281 = vmatmul.mubr.bf16.vlgmr.msra.gmra.mxu1 %v4214_v41  ;;  %3259 = vmatpush3.bf16.msra.mxu0 %v3552_v44  ;;  %v3558_v41 = vld [vmem:[%s4991_s4 + $0x20] sm:$0xff]  }
  0xa4   :  { %3260 = vmatprep.subr.bf16.mxu0 %v3553_v45 }
  0xa7   :  { %3261 = vmatpush3.bf16.msra.mxu0 %v3554_v46 }
  0xa8   :  { %3262 = vmatprep.subr.bf16.mxu0 %v3555_v47 }
  0xab   :  { %3263 = vmatpush3.bf16.msra.mxu0 %v3556_v48 }
  0xac   :  { %3264 = vmatprep.subr.bf16.mxu0 %v3557_v7 }
  0xaf   :  { %3265 = vmatpush3.bf16.msra.mxu0 %v3558_v41 }
  0xb0   :  { %3266 = vmatprep.subr.bf16.mxu0 %v3559_v49 }
  0xb3   :  { %3267 = vmatpush3.bf16.msra.mxu0 %v3560_v50 }
  0xb4   :  { %3268 = vmatprep.subr.bf16.mxu0 %v3561_v52 }
  0xb5   :  { %18 = vsyncpa [#allocation5], 0  ;;  %v3564_v54 = vld [vmem:[%s4991_s4 + $0x8] sm:$0xff]   ;;  %v3565_v55 = vld [vmem:[%s4991_s4 + $0x40] sm:$0xff]   ;;  %v205_v12 = vlaneseq  ;;  %vm1504_vm0 = vcmask 130048   ;;  %vm1685_vm1 = vcmask 1043456  }
  0xb6   :  { %v3566_v56 = vld [vmem:[%s4991_s4] sm:$0xff]   ;;  %v3567_v57 = vld [vmem:[%s4991_s4 + $0xb8] sm:$0xff]   ;;  %v3568_v58 = vld [vmem:[%s4991_s4 + $0xb0] sm:$0xff]   ;;  %vm2892_vm2 = vcmask 654336   ;;  %vm1681_vm3 = vcmask 326656  }
  0xb7   :  { %3269 = vmatpush3.bf16.msra.mxu0 %v3562_v53  ;;  %1549 = vmatpush1.bf16.msra.mxu1 %v3567_v57  ;;  %v3569_v59 = vld [vmem:[%s4991_s4 + $0xa8] sm:$0xff]   ;;  %v3570_v60 = vld [vmem:[%s4991_s4 + $0xa0] sm:$0xff]   ;;  %v3571_v61 = vld [vmem:[%s4991_s4 + $0x98] sm:$0xff]   ;;  %v4492_v13 = vshrl.u32 %v205_v12, 7 }
  0xb8   :  { %3270 = vmatprep.subr.bf16.mxu0 %v3563_v51  ;;  %1550 = vmatprep.subr.bf16.mxu1 %v3833_v16  ;;  %v3572_v62 = vld [vmem:[%s4991_s4 + $0x90] sm:$0xff]   ;;  %v3573_v63 = vld [vmem:[%s4991_s4 + $0x88] sm:$0xff]   ;;  %v3574_v0 = vld [vmem:[%s4991_s4 + $0x80] sm:$0xff]  }
  0xb9   :  { %v3575_v1 = vld [vmem:[%s4991_s4 + $0xc0] sm:$0xff]   ;;  %v4495_v14 = vsub.s32 0, %v4492_v13  ;;  %v4501_v17 = vsub.s32 1, %v4492_v13  ;;  %v4507_v37 = vsub.s32 2, %v4492_v13  ;;  %v4510_v38 = vsub.s32 3, %v4492_v13 }
  0xba   :  { %v203_v15 = vld [vmem:[%s4990_s3] sm:$0xf]  ;;  %s3834_s3 = smov 88  }
  0xbb   :  { %3271 = vmatpush3.bf16.msra.mxu0 %v3564_v54  ;;  %1551 = vmatpush1.bf16.msra.mxu1 %v3568_v58  ;;  %v208_v18 = vrot.slane %v203_v15, %v4495_v14  ;;  %v212_v19 = vrot.slane %v203_v15, %v4501_v17  ;;  %v216_v39 = vrot.slane %v203_v15, %v4507_v37  ;;  %v1607_v58 = vld [vmem:[%s4993_s6 + $0x40] sm:$0xff] }
  0xbc   :  { %3272 = vmatprep.subr.bf16.mxu0 %v3565_v55  ;;  %1552 = vmatprep.subr.bf16.mxu1 %v3833_v16  ;;  %v220_v40 = vrot.slane %v203_v15, %v4510_v38  ;;  %v3087_v15 = vld [vmem:[%s4992_s5] ss:$0 sm:$0xff] }
  0xbf   :  { %3273 = vmatpush3.bf16.msra.mxu0 %v3566_v56  ;;  %1553 = vmatpush1.bf16.msra.mxu1 %v3569_v59  ;;  %v1608_v59 = vld [vmem:[%s4993_s6 + $0x48] sm:$0xff] }
  0xc0   :  { %1554 = vmatprep.subr.bf16.mxu1 %v3833_v16 }
  0xc3   :  { %1555 = vmatpush1.bf16.msra.mxu1 %v3570_v60  ;;  %v3123_v60 = vcombine.high %v1607_v58, %v1607_v58 }
  0xc4   :  { %1556 = vmatprep.subr.bf16.mxu1 %v3833_v16 }
  0xc5   :  { %3126 = vmatprep.subr.msk.bf16.mxu0 %vm1685_vm1, %v3123_v60  ;;  %v3612_v60 = vld [vmem:[%s4995_s8 + $0x2c] ss:$20 sps:$4 sm:$0xff]  }
  0xc7   :  { %1557 = vmatpush1.bf16.msra.mxu1 %v3571_v61  ;;  %v3125_v61 = vcombine.high %v1608_v59, %v1608_v59 }
  0xc8   :  { %1558 = vmatprep.subr.bf16.mxu1 %v3833_v16 }
  0xcb   :  { %1559 = vmatpush1.bf16.msra.mxu1 %v3572_v62  ;;  %v3122_v62 = vcombine.low %v1607_v58, %v1607_v58  ;;  %v3607_v58 = vld [vmem:[%s4995_s8 + $0x50] ss:$20 sps:$4 sm:$0xff]  }
  0xcc   :  { %1560 = vmatprep.subr.bf16.mxu1 %v3833_v16 }
  0xcf   :  { %1561 = vmatpush1.bf16.msra.mxu1 %v3573_v63  ;;  %v3124_v63 = vcombine.low %v1608_v59, %v1608_v59  ;;  %v3646_v59 = vld [vmem:[%s4995_s8 + $0x2d0] ss:$20 sps:$4 sm:$0xff]  }
  0xd0   :  { %1562 = vmatprep.subr.bf16.mxu1 %v3833_v16 }
  0xd3   :  { %1563 = vmatpush1.bf16.msra.mxu1 %v3574_v0  ;;  %v3582_v0 = vld [vmem:[%s4993_s6 + $0x24] ss:$16 sps:$4 sm:$0xff]  }
  0xd4   :  { %1578 = vmatprep.subr.bf16.mxu1 %v3833_v16 }
  0xd7   :  { %1579 = vmatpush2.bf16.msra.mxu1 %v3575_v1  ;;  %v3585_v1 = vld [vmem:[%s4993_s6 + $0x2c] ss:$16 sps:$4 sm:$0xff]  }
  0xd8   :  { %3128 = vmatprep.subr.msk.bf16.mxu1 %vm1685_vm1, %v3125_v61  ;;  %v3654_v61 = vld [vmem:[%s4995_s8 + $0x2ac] ss:$20 sps:$4 sm:$0xff]  }
 0x102   :  { %v1077_v2 = vpop.f32.mrf.mxu0 }
 0x103   :  { %v1118_v3 = vpop.f32.mrf.mxu1  ;;  %v1078_v20 = vadd.f32 %v1077_v2, %v208_v18  ;;  %v1687_v2 = vsel %vm1685_vm1, %v3122_v62, 0  ;;  %v3610_v62 = vld [vmem:[%s4995_s8 + $0x28] ss:$20 sps:$4 sm:$0xff]  }
 0x104   :  { %v1079_v4 = vpop.f32.mrf.mxu0 }
 0x105   :  { %v1120_v5 = vpop.f32.mrf.mxu1  ;;  %v1080_v21 = vadd.f32 %v1079_v4, %v212_v19  ;;  %v1119_v6 = vadd.f32 %v1118_v3, %v1078_v20  ;;  %v1693_v3 = vsel %vm1685_vm1, %v3124_v63, 0  ;;  %v3580_v4 = vld [vmem:[%s4993_s6 + $0x20] ss:$16 sps:$4 sm:$0xff]   ;;  %v3652_v63 = vld [vmem:[%s4995_s8 + $0x2a8] ss:$20 sps:$4 sm:$0xff]  }
 0x106   :  { %v1081_v8 = vpop.f32.mrf.mxu0 }
 0x107   :  { %v1122_v9 = vpop.f32.mrf.mxu1  ;;  %v1121_v23 = vadd.f32 %v1120_v5, %v1080_v21  ;;  %v3583_v5 = vld [vmem:[%s4993_s6 + $0x28] ss:$16 sps:$4 sm:$0xff]  }
 0x108   :  { %v1082_v10 = vpop.f32.mrf.mxu0 }
 0x109   :  { %v1123_v11 = vpop.f32.mrf.mxu1 }
 0x122   :  { %v1159_v22 = vpop.f32.mrf.mxu0 }
 0x123   :  { %v1160_v24 = vadd.f32 %v1159_v22, %v1119_v6 }
 0x124   :  { %v1161_v25 = vpop.f32.mrf.mxu0 }
 0x125   :  { %v1162_v26 = vadd.f32 %v1161_v25, %v1121_v23  ;;  %v1289_v27 = vmax.f32 %v1160_v24, 0.0  ;;  %v3588_v25 = vld [vmem:[%s4993_s6 + $0x4] ss:$16 sps:$4 sm:$0xff]  }
 0x126   :  { %v1163_v28 = vpop.f32.mrf.mxu0 }
 0x127   :  { %v1290_v29 = vmax.f32 %v1162_v26, 0.0  ;;  %v1293_v32 = vpack.c.bf16 %v1289_v27, %v1289_v27  ;;  %v3591_v26 = vld [vmem:[%s4993_s6 + $0xc] ss:$16 sps:$4 sm:$0xff]   ;;  %v3586_v27 = vld [vmem:[%s4993_s6] ss:$16 sps:$4 sm:$0xff]  }
 0x128   :  { %v1164_v30 = vpop.f32.mrf.mxu0  ;;  %v3589_v28 = vld [vmem:[%s4993_s6 + $0x8] ss:$16 sps:$4 sm:$0xff]  }
 0x129   :  { %v1294_v31 = vpack.c.bf16 %v1290_v29, %v1290_v29  ;;  %v3594_v29 = vld [vmem:[%s4995_s8 + $0x11c] ss:$20 sps:$4 sm:$0xff]  }
 0x12b   :  { %1540 = vmatprep.mubr.bf16.mxu0 %v1294_v31  ;;  %v3618_v31 = vld [vmem:[%s4995_s8 + $0x39c] ss:$20 sps:$4 sm:$0xff]  }
 0x12c   :  { %1541 = vmatmul.mubr.bf16.vlgmr.msra.gmra.mxu0 %v1293_v32  ;;  %v1588_v32 = vld [vmem:[%s4988_s1] sm:$0xff] }
 0x12d   :  { %1730 = vmatprep.mubr.bf16.mxu0 %v3833_v16  ;;  %1709 = vmatpush1.bf16.msra.mxu0 %v1687_v2  ;;  %v3621_v2 = vld [vmem:[%s4995_s8 + $0x25c] ss:$20 sps:$4 sm:$0xff]  }
 0x12e   :  { %1710 = vmatprep.subr.bf16.mxu0 %v3582_v0  ;;  %v3615_v0 = vld [vmem:[%s4995_s8 + $0x4] ss:$20 sps:$4 sm:$0xff]  }
 0x131   :  { %1711 = vmatpush1.bf16.msra.mxu0 %v3580_v4  ;;  %v3627_v4 = vld [vmem:[%s4995_s8 + $0x234] ss:$20 sps:$4 sm:$0xff]  }
 0x132   :  { %1712 = vmatprep.subr.bf16.mxu0 %v3588_v25  ;;  %v3661_v25 = vld [vmem:[%s4995_s8 + $0x140] ss:$20 sps:$4 sm:$0xff]  }
 0x135   :  { %1713 = vmatpush1.bf16.msra.mxu0 %v3586_v27  ;;  %v3669_v27 = vld [vmem:[%s4995_s8 + $0x124] ss:$20 sps:$4 sm:$0xff]  }
 0x136   :  { %2618 = vmatprep.subr.bf16.mxu0 %v3594_v29  ;;  %v1609_v29 = vld [vmem:[%s4994_s7] sm:$0xf] }
 0x143   :  { %v1200_v33 = vpop.f32.mrf.mxu1 }
 0x144   :  { %v1201_v42 = vadd.f32 %v1200_v33, %v216_v39  ;;  %v3616_v39 = vld [vmem:[%s4995_s8 + $0x398] ss:$20 sps:$4 sm:$0xff]  }
 0x145   :  { %v1202_v34 = vpop.f32.mrf.mxu1 }
 0x146   :  { %v1203_v45 = vadd.f32 %v1202_v34, %v220_v40 }
 0x147   :  { %v1204_v35 = vpop.f32.mrf.mxu1 }
 0x149   :  { %v1205_v36 = vpop.f32.mrf.mxu1 }
 0x14a   :  { %v3592_v36 = vld [vmem:[%s4995_s8 + $0x118] ss:$20 sps:$4 sm:$0xff]  }
 0x162   :  { %v1241_v43 = vpop.f32.mrf.mxu0 }
 0x163   :  { %v1282_v44 = vpop.f32.mrf.mxu1  ;;  %v1242_v46 = vadd.f32 %v1241_v43, %v1201_v42  ;;  %v3597_v42 = vld [vmem:[%s4995_s8 + $0xf4] ss:$20 sps:$4 sm:$0xff]  }
 0x164   :  { %v1243_v47 = vpop.f32.mrf.mxu0  ;;  %v3624_v43 = vld [vmem:[%s4995_s8 + $0x374] ss:$20 sps:$4 sm:$0xff]  }
 0x165   :  { %v1284_v48 = vpop.f32.mrf.mxu1  ;;  %v1283_v7 = vadd.f32 %v1282_v44, %v1242_v46  ;;  %v1244_v41 = vadd.f32 %v1243_v47, %v1203_v45  ;;  %v3595_v44 = vld [vmem:[%s4995_s8 + $0xf0] ss:$20 sps:$4 sm:$0xff]   ;;  %v3600_v46 = vld [vmem:[%s4995_s8 + $0xcc] ss:$20 sps:$4 sm:$0xff]  }
 0x166   :  { %v1245_v49 = vpop.f32.mrf.mxu0  ;;  %v3622_v45 = vld [vmem:[%s4995_s8 + $0x370] ss:$20 sps:$4 sm:$0xff]   ;;  %v3630_v47 = vld [vmem:[%s4995_s8 + $0x34c] ss:$20 sps:$4 sm:$0xff]  }
 0x167   :  { %v1286_v50 = vpop.f32.mrf.mxu1  ;;  %v1285_v52 = vadd.f32 %v1284_v48, %v1244_v41  ;;  %v1291_v53 = vmax.f32 %v1283_v7, 0.0  ;;  %v3598_v48 = vld [vmem:[%s4995_s8 + $0xc8] ss:$20 sps:$4 sm:$0xff]   ;;  %v3603_v41 = vld [vmem:[%s4995_s8 + $0xa4] ss:$20 sps:$4 sm:$0xff]  }
 0x168   :  { %v1246_v51 = vpop.f32.mrf.mxu0  ;;  %v3628_v7 = vld [vmem:[%s4995_s8 + $0x348] ss:$20 sps:$4 sm:$0xff]   ;;  %v3636_v49 = vld [vmem:[%s4995_s8 + $0x324] ss:$20 sps:$4 sm:$0xff]   ;;  %v3601_v50 = vld [vmem:[%s4995_s8 + $0xa0] ss:$20 sps:$4 sm:$0xff]  }
 0x169   :  { %v1287_v54 = vpop.f32.mrf.mxu1  ;;  %v1292_v55 = vmax.f32 %v1285_v52, 0.0  ;;  %v1295_v57 = vpack.c.bf16 %v1291_v53, %v1291_v53  ;;  %v3634_v52 = vld [vmem:[%s4995_s8 + $0x320] ss:$20 sps:$4 sm:$0xff]   ;;  %v3606_v53 = vld [vmem:[%s4995_s8 + $0x7c] ss:$20 sps:$4 sm:$0xff]  }
 0x16a   :  { %v3642_v51 = vld [vmem:[%s4995_s8 + $0x2fc] ss:$20 sps:$4 sm:$0xff]   ;;  %v3604_v54 = vld [vmem:[%s4995_s8 + $0x78] ss:$20 sps:$4 sm:$0xff]  }
 0x16b   :  { %v1296_v56 = vpack.c.bf16 %v1292_v55, %v1292_v55  ;;  %v3640_v55 = vld [vmem:[%s4995_s8 + $0x2f8] ss:$20 sps:$4 sm:$0xff]  }
 0x16d   :  { %3113 = vmatprep.mubr.msk.bf16.mxu1 %vm1504_vm0, %v1296_v56  ;;  %v3609_v56 = vld [vmem:[%s4995_s8 + $0x54] ss:$20 sps:$4 sm:$0xff]  }
 0x16e   :  { %1581 = vmatmul.mubr.bf16.vlgmr.msra.gmra.mxu1 %v1295_v57  ;;  %v3648_v57 = vld [vmem:[%s4995_s8 + $0x2d4] ss:$20 sps:$4 sm:$0xff]  }
 0x16f   :  { %1771 = vmatprep.mubr.bf16.mxu1 %v3833_v16  ;;  %1750 = vmatpush1.bf16.msra.mxu1 %v1693_v3  ;;  %v3619_v3 = vld [vmem:[%s4995_s8 + $0x258] ss:$20 sps:$4 sm:$0xff]  }
 0x170   :  { %1751 = vmatprep.subr.bf16.mxu1 %v3585_v1  ;;  %v3613_v1 = vld [vmem:[%s4995_s8] ss:$20 sps:$4 sm:$0xff]  }
 0x173   :  { %1752 = vmatpush1.bf16.msra.mxu1 %v3583_v5  ;;  %v3625_v5 = vld [vmem:[%s4995_s8 + $0x230] ss:$20 sps:$4 sm:$0xff]  }
 0x174   :  { %1753 = vmatprep.subr.bf16.mxu1 %v3591_v26  ;;  %v3664_v26 = vld [vmem:[%s4995_s8 + $0x3c0] ss:$20 sps:$4 sm:$0xff]  }
 0x177   :  { %1754 = vmatpush1.bf16.msra.mxu1 %v3589_v28  ;;  %v3672_v28 = vld [vmem:[%s4995_s8 + $0x3a4] ss:$20 sps:$4 sm:$0xff]  }
 0x178   :  { %2659 = vmatprep.subr.bf16.mxu1 %v3618_v31  ;;  %v1622_v31 = vrot.slane %v1609_v29, %v4507_v37 }
 0x1ec   :  { %v3274_v8 = vpop.f32.mrf.mxu0 }
 0x1ee   :  { %v3275_v9 = vpop.f32.mrf.mxu0 }
 0x1ef   :  { %v3276_v12 = vadd.f32 %v3275_v9, %v3274_v8  ;;  %v3633_v8 = vld [vmem:[%s4995_s8 + $0x20c] ss:$20 sps:$4 sm:$0xff]   ;;  %v3631_v9 = vld [vmem:[%s4995_s8 + $0x208] ss:$20 sps:$4 sm:$0xff]  }
 0x1f0   :  { %v3277_v10 = vpop.f32.mrf.mxu0 }
 0x1f1   :  { %v1543_v18 = vadd.f32 %v3276_v12, %v3087_v15  ;;  %v3639_v10 = vld [vmem:[%s4995_s8 + $0x1e4] ss:$20 sps:$4 sm:$0xff]   ;;  %v3645_v12 = vld [vmem:[%s4995_s8 + $0x1bc] ss:$20 sps:$4 sm:$0xff]  }
 0x1f2   :  { %v3278_v11 = vpop.f32.mrf.mxu0  ;;  %v3643_v15 = vld [vmem:[%s4995_s8 + $0x1b8] ss:$20 sps:$4 sm:$0xff]  }
 0x1f3   :  { %v3637_v11 = vld [vmem:[%s4995_s8 + $0x1e0] ss:$20 sps:$4 sm:$0xff]  }
 0x22e   :  { %v1582_v19 = vpop.f32.mrf.mxu1 }
 0x22f   :  { %v1583_v20 = vadd.f32 %v1582_v19, %v1543_v18  ;;  %v3651_v18 = vld [vmem:[%s4995_s8 + $0x194] ss:$20 sps:$4 sm:$0xff]   ;;  %v3649_v19 = vld [vmem:[%s4995_s8 + $0x190] ss:$20 sps:$4 sm:$0xff]  }
 0x230   :  { %v1584_v21 = vpop.f32.mrf.mxu1 }
 0x231   :  { %v1589_v6 = vmul.f32 0.5, %v1583_v20  ;;  %2893 = vst.msk [vmem:[#allocation4] sm:$0xff] %vm2892_vm2, %v1583_v20  ;;  %v3660_v21 = vld [vmem:[%s4995_s8 + $0x284] ss:$20 sps:$4 sm:$0xff]  }
 0x232   :  { %v1585_v22 = vpop.f32.mrf.mxu1 }
 0x233   :  { %v1590_v23 = vmul.f32 1.442695, %v1589_v6  ;;  %v3655_v6 = vld [vmem:[%s4995_s8 + $0x168] ss:$20 sps:$4 sm:$0xff]   ;;  %v3658_v22 = vld [vmem:[%s4995_s8 + $0x280] ss:$20 sps:$4 sm:$0xff]  }
 0x234   :  { %v1586_v24 = vpop.f32.mrf.mxu1 }
 0x235   :  { %3767 = vpow2.f32 %v1590_v23  ;;  %v3663_v23 = vld [vmem:[%s4995_s8 + $0x144] ss:$20 sps:$4 sm:$0xff]  }
 0x236   :  { %v3666_v24 = vld [vmem:[%s4995_s8 + $0x3c4] ss:$20 sps:$4 sm:$0xff]  }
 0x242   :  { %v3768_v30 = vpop.eup %3767 }
 0x243   :  { %1593 = vrot.lane.b32.xlu0 %v3768_v30, %s3834_s3  ;;  %v1614_v30 = vrot.slane %v1609_v29, %v4495_v14 }
 0x2b5   :  { %v1594_v33 = vpop.permute.xlu0 %1593 }
 0x2b6   :  { %v1596_v34 = vmul.f32 %v1594_v33, %v1588_v32  ;;  %v1618_v32 = vrot.slane %v1609_v29, %v4501_v17  ;;  %v1626_v33 = vrot.slane %v1609_v29, %v4510_v38  ;;  %v3718_v29 = vld [vmem:[%s4995_s8 + $0x3c8] ss:$20 sps:$4 sm:$0xff]  }
 0x2b8   :  { %v1597_v35 = vadd.f32 %v1596_v34, %v1583_v20  ;;  %v3657_v20 = vld [vmem:[%s4995_s8 + $0x16c] ss:$20 sps:$4 sm:$0xff]  }
 0x2ba   :  { %v1598_v40 = vpack.c.bf16 %v1597_v35, %v1597_v35 }
 0x2bc   :  { %3127 = vmatmul.mubr.msk.bf16.vlgmr.msra.gmra.mxu0 %vm1681_vm3, %v1598_v40  ;;  %3129 = vmatmul.mubr.msk.bf16.vlgmr.msra.gmra.mxu1 %vm1681_vm3, %v1598_v40 }
 0x2bd   :  { %2619 = vmatpush1.bf16.msra.mxu0 %v3592_v36  ;;  %2660 = vmatpush1.bf16.msra.mxu1 %v3616_v39 }
 0x2be   :  { %2620 = vmatprep.subr.bf16.mxu0 %v3597_v42  ;;  %2661 = vmatprep.subr.bf16.mxu1 %v3624_v43 }
 0x2c1   :  { %2621 = vmatpush1.bf16.msra.mxu0 %v3595_v44  ;;  %2662 = vmatpush1.bf16.msra.mxu1 %v3622_v45 }
 0x2c2   :  { %2622 = vmatprep.subr.bf16.mxu0 %v3600_v46  ;;  %2663 = vmatprep.subr.bf16.mxu1 %v3630_v47 }
 0x2c5   :  { %2623 = vmatpush1.bf16.msra.mxu0 %v3598_v48  ;;  %2664 = vmatpush1.bf16.msra.mxu1 %v3628_v7 }
 0x2c6   :  { %2624 = vmatprep.subr.bf16.mxu0 %v3603_v41  ;;  %2665 = vmatprep.subr.bf16.mxu1 %v3636_v49 }
 0x2c9   :  { %2625 = vmatpush1.bf16.msra.mxu0 %v3601_v50  ;;  %2666 = vmatpush1.bf16.msra.mxu1 %v3634_v52 }
 0x2ca   :  { %2626 = vmatprep.subr.bf16.mxu0 %v3606_v53  ;;  %2667 = vmatprep.subr.bf16.mxu1 %v3642_v51  ;;  %v3667_v51 = vld [vmem:[%s4995_s8 + $0x120] ss:$20 sps:$4 sm:$0xff]  }
 0x2cd   :  { %2627 = vmatpush1.bf16.msra.mxu0 %v3604_v54  ;;  %2668 = vmatpush1.bf16.msra.mxu1 %v3640_v55  ;;  %v3670_v54 = vld [vmem:[%s4995_s8 + $0x3a0] ss:$20 sps:$4 sm:$0xff]  }
 0x2ce   :  { %2628 = vmatprep.subr.bf16.mxu0 %v3609_v56  ;;  %2669 = vmatprep.subr.bf16.mxu1 %v3648_v57  ;;  %v3675_v57 = vld [vmem:[%s4995_s8 + $0xfc] ss:$20 sps:$4 sm:$0xff]  }
 0x2d1   :  { %2629 = vmatpush1.bf16.msra.mxu0 %v3607_v58  ;;  %2670 = vmatpush1.bf16.msra.mxu1 %v3646_v59  ;;  %v3678_v58 = vld [vmem:[%s4995_s8 + $0x37c] ss:$20 sps:$4 sm:$0xff]   ;;  %v3673_v59 = vld [vmem:[%s4995_s8 + $0xf8] ss:$20 sps:$4 sm:$0xff]  }
 0x2d2   :  { %2630 = vmatprep.subr.bf16.mxu0 %v3612_v60  ;;  %2671 = vmatprep.subr.bf16.mxu1 %v3654_v61  ;;  %v3676_v60 = vld [vmem:[%s4995_s8 + $0x378] ss:$20 sps:$4 sm:$0xff]   ;;  %v3681_v61 = vld [vmem:[%s4995_s8 + $0xd4] ss:$20 sps:$4 sm:$0xff]  }
 0x2d5   :  { %2631 = vmatpush1.bf16.msra.mxu0 %v3610_v62  ;;  %2672 = vmatpush1.bf16.msra.mxu1 %v3652_v63  ;;  %v3684_v62 = vld [vmem:[%s4995_s8 + $0x354] ss:$20 sps:$4 sm:$0xff]   ;;  %v3679_v63 = vld [vmem:[%s4995_s8 + $0xd0] ss:$20 sps:$4 sm:$0xff]  }
 0x2d6   :  { %2632 = vmatprep.subr.bf16.mxu0 %v3615_v0  ;;  %2673 = vmatprep.subr.bf16.mxu1 %v3660_v21  ;;  %v3682_v0 = vld [vmem:[%s4995_s8 + $0x350] ss:$20 sps:$4 sm:$0xff]  }
 0x2d7   :  { %v3703_v21 = vld [vmem:[%s4995_s8 + $0x30] ss:$20 sps:$4 sm:$0xff]  }
 0x2d9   :  { %2633 = vmatpush1.bf16.msra.mxu0 %v3613_v1  ;;  %2674 = vmatpush1.bf16.msra.mxu1 %v3658_v22  ;;  %v3687_v1 = vld [vmem:[%s4995_s8 + $0xac] ss:$20 sps:$4 sm:$0xff]  }
 0x2da   :  { %2634 = vmatprep.subr.bf16.mxu0 %v3621_v2  ;;  %2689 = vmatprep.subr.bf16.mxu1 %v3666_v24  ;;  %v3690_v2 = vld [vmem:[%s4995_s8 + $0x32c] ss:$20 sps:$4 sm:$0xff]   ;;  %v3709_v24 = vld [vmem:[%s4995_s8 + $0x8] ss:$20 sps:$4 sm:$0xff]  }
 0x2db   :  { %v3711_v22 = vld [vmem:[%s4995_s8 + $0xc] ss:$20 sps:$4 sm:$0xff]  }
 0x2dd   :  { %2635 = vmatpush2.bf16.msra.mxu0 %v3619_v3  ;;  %2690 = vmatpush2.bf16.msra.mxu1 %v3664_v26  ;;  %v3685_v3 = vld [vmem:[%s4995_s8 + $0xa8] ss:$20 sps:$4 sm:$0xff]   ;;  %v3717_v26 = vld [vmem:[%s4995_s8 + $0x264] ss:$20 sps:$4 sm:$0xff]  }
 0x2de   :  { %2636 = vmatprep.subr.bf16.mxu0 %v3627_v4  ;;  %2700 = vmatprep.subr.bf16.mxu1 %v3669_v27  ;;  %v3688_v4 = vld [vmem:[%s4995_s8 + $0x328] ss:$20 sps:$4 sm:$0xff]   ;;  %v3720_v27 = vld [vmem:[%s4995_s8 + $0x3cc] ss:$20 sps:$4 sm:$0xff]  }
 0x2e1   :  { %2637 = vmatpush2.bf16.msra.mxu0 %v3625_v5  ;;  %v3693_v5 = vld [vmem:[%s4995_s8 + $0x84] ss:$20 sps:$4 sm:$0xff]  }
 0x2e2   :  { %2638 = vmatprep.subr.bf16.mxu0 %v3633_v8  ;;  %v3696_v8 = vld [vmem:[%s4995_s8 + $0x304] ss:$20 sps:$4 sm:$0xff]  }
 0x2e5   :  { %2639 = vmatpush2.bf16.msra.mxu0 %v3631_v9  ;;  %v3691_v9 = vld [vmem:[%s4995_s8 + $0x80] ss:$20 sps:$4 sm:$0xff]  }
 0x2e6   :  { %2640 = vmatprep.subr.bf16.mxu0 %v3639_v10  ;;  %v3694_v10 = vld [vmem:[%s4995_s8 + $0x300] ss:$20 sps:$4 sm:$0xff]  }
 0x2e9   :  { %2641 = vmatpush2.bf16.msra.mxu0 %v3637_v11  ;;  %v3699_v11 = vld [vmem:[%s4995_s8 + $0x5c] ss:$20 sps:$4 sm:$0xff]  }
 0x2ea   :  { %2642 = vmatprep.subr.bf16.mxu0 %v3645_v12  ;;  %v3702_v12 = vld [vmem:[%s4995_s8 + $0x2dc] ss:$20 sps:$4 sm:$0xff]  }
 0x2ed   :  { %2643 = vmatpush2.bf16.msra.mxu0 %v3643_v15  ;;  %v3697_v15 = vld [vmem:[%s4995_s8 + $0x58] ss:$20 sps:$4 sm:$0xff]  }
 0x2ee   :  { %2644 = vmatprep.subr.bf16.mxu0 %v3651_v18  ;;  %v3700_v18 = vld [vmem:[%s4995_s8 + $0x2d8] ss:$20 sps:$4 sm:$0xff]  }
 0x2f1   :  { %2645 = vmatpush2.bf16.msra.mxu0 %v3649_v19  ;;  %v3705_v19 = vld [vmem:[%s4995_s8 + $0x34] ss:$20 sps:$4 sm:$0xff]  }
 0x2f2   :  { %2646 = vmatprep.subr.bf16.mxu0 %v3657_v20  ;;  %v3708_v20 = vld [vmem:[%s4995_s8 + $0x2b4] ss:$20 sps:$4 sm:$0xff]  }
 0x2f5   :  { %2647 = vmatpush2.bf16.msra.mxu0 %v3655_v6  ;;  %v3706_v6 = vld [vmem:[%s4995_s8 + $0x2b0] ss:$20 sps:$4 sm:$0xff]  }
 0x2f6   :  { %2648 = vmatprep.subr.bf16.mxu0 %v3663_v23  ;;  %v3714_v23 = vld [vmem:[%s4995_s8 + $0x28c] ss:$20 sps:$4 sm:$0xff]  }
 0x2f9   :  { %2649 = vmatpush2.bf16.msra.mxu0 %v3661_v25  ;;  %v3712_v25 = vld [vmem:[%s4995_s8 + $0x288] ss:$20 sps:$4 sm:$0xff]  }
 0x2fa   :  { %2741 = vmatprep.subr.bf16.mxu0 %v3672_v28  ;;  %v3715_v28 = vld [vmem:[%s4995_s8 + $0x260] ss:$20 sps:$4 sm:$0xff]  }
 0x37c   :  { %v1732_v34 = vpop.f32.mrf.mxu0  ;;  %v1773_v35 = vpop.f32.mrf.mxu1 }
 0x37d   :  { %v1733_v36 = vadd.f32 %v1732_v34, %v1614_v30  ;;  %v1774_v39 = vadd.f32 %v1773_v35, %v1622_v31  ;;  %v3723_v30 = vld [vmem:[%s4995_s8 + $0x23c] ss:$20 sps:$4 sm:$0xff]   ;;  %v3728_v34 = vld [vmem:[%s4995_s8 + $0x214] ss:$20 sps:$4 sm:$0xff]  }
 0x37e   :  { %v1734_v40 = vpop.f32.mrf.mxu0  ;;  %v1775_v42 = vpop.f32.mrf.mxu1  ;;  %v3724_v31 = vld [vmem:[%s4995_s8 + $0x268] ss:$20 sps:$4 sm:$0xff]   ;;  %v3729_v35 = vld [vmem:[%s4995_s8 + $0x240] ss:$20 sps:$4 sm:$0xff]  }
 0x37f   :  { %v1735_v43 = vadd.f32 %v1734_v40, %v1618_v32  ;;  %v1776_v44 = vadd.f32 %v1775_v42, %v1626_v33  ;;  %v1780_v45 = vmax.f32 %v1733_v36, 0.0  ;;  %v1782_v46 = vmax.f32 %v1774_v39, 0.0  ;;  %v3721_v32 = vld [vmem:[%s4995_s8 + $0x238] ss:$20 sps:$4 sm:$0xff]   ;;  %v3725_v33 = vld [vmem:[%s4995_s8 + $0x128] ss:$20 sps:$4 sm:$0xff]  }
 0x380   :  { %v1736_v47 = vpop.f32.mrf.mxu0  ;;  %v1777_v48 = vpop.f32.mrf.mxu1  ;;  %v3726_v36 = vld [vmem:[%s4995_s8 + $0x210] ss:$20 sps:$4 sm:$0xff]   ;;  %v3730_v39 = vld [vmem:[%s4995_s8 + $0x100] ss:$20 sps:$4 sm:$0xff]   ;;  %v3734_v42 = vld [vmem:[%s4995_s8 + $0x218] ss:$20 sps:$4 sm:$0xff]  }
 0x381   :  { %v1781_v7 = vmax.f32 %v1735_v43, 0.0  ;;  %v1783_v41 = vmax.f32 %v1776_v44, 0.0  ;;  %v4725_v55 = vpack.c.bf16 %v1780_v45, %v1780_v45  ;;  %v4727_v56 = vpack.c.bf16 %v1782_v46, %v1782_v46  ;;  %v3733_v40 = vld [vmem:[%s4995_s8 + $0x1ec] ss:$20 sps:$4 sm:$0xff]   ;;  %v3731_v43 = vld [vmem:[%s4995_s8 + $0x1e8] ss:$20 sps:$4 sm:$0xff]  }
 0x382   :  { %v1737_v49 = vpop.f32.mrf.mxu0  ;;  %v1778_v50 = vpop.f32.mrf.mxu1  ;;  %v3735_v44 = vld [vmem:[%s4995_s8 + $0xd8] ss:$20 sps:$4 sm:$0xff]   ;;  %v3739_v46 = vld [vmem:[%s4995_s8 + $0x1f0] ss:$20 sps:$4 sm:$0xff]   ;;  %v3736_v47 = vld [vmem:[%s4995_s8 + $0x1c0] ss:$20 sps:$4 sm:$0xff]  }
 0x383   :  { %v4715_v52 = vpack.c.bf16 %v1781_v7, %v1781_v7  ;;  %v4717_v53 = vpack.c.bf16 %v1783_v41, %v1783_v41  ;;  %v3738_v45 = vld [vmem:[%s4995_s8 + $0x1c4] ss:$20 sps:$4 sm:$0xff]   ;;  %v3743_v7 = vld [vmem:[%s4995_s8 + $0x19c] ss:$20 sps:$4 sm:$0xff]  }
 0x384   :  { %v3740_v48 = vld [vmem:[%s4995_s8 + $0xb0] ss:$20 sps:$4 sm:$0xff]   ;;  %v3744_v41 = vld [vmem:[%s4995_s8 + $0x1c8] ss:$20 sps:$4 sm:$0xff]   ;;  %v3741_v49 = vld [vmem:[%s4995_s8 + $0x198] ss:$20 sps:$4 sm:$0xff]  }
 0x385   :  { %2650 = vmatprep.mubr.bf16.mxu0 %v4715_v52  ;;  %3255 = vmatprep.mubr.msk.bf16.mxu1 %vm1504_vm0, %v4717_v53  ;;  %v3745_v50 = vld [vmem:[%s4995_s8 + $0x88] ss:$20 sps:$4 sm:$0xff]  }
 0x386   :  { %2651 = vmatmul.mubr.bf16.vlgmr.msra.gmra.mxu0 %v4725_v55  ;;  %2692 = vmatmul.mubr.bf16.vlgmr.msra.gmra.mxu1 %v4727_v56 }
 0x387   :  { %2701 = vmatpush1.bf16.msra.mxu1 %v3667_v51  ;;  %2742 = vmatpush1.bf16.msra.mxu0 %v3670_v54  ;;  %v3749_v51 = vld [vmem:[%s4995_s8 + $0x1a0] ss:$20 sps:$4 sm:$0xff]   ;;  %v3746_v54 = vld [vmem:[%s4995_s8 + $0x170] ss:$20 sps:$4 sm:$0xff]  }
 0x388   :  { %2732 = vmatprep.mubr.bf16.mxu1 %v4715_v52  ;;  %3256 = vmatprep.mubr.msk.bf16.mxu0 %vm1504_vm0, %v4717_v53 }
 0x389   :  { %2702 = vmatprep.subr.bf16.mxu1 %v3675_v57  ;;  %2743 = vmatprep.subr.bf16.mxu0 %v3678_v58  ;;  %v3750_v57 = vld [vmem:[%s4995_s8 + $0x60] ss:$20 sps:$4 sm:$0xff]  }
 0x38a   :  { %v3753_v58 = vld [vmem:[%s4995_s8 + $0x14c] ss:$20 sps:$4 sm:$0xff]  }
 0x38b   :  { %2703 = vmatpush1.bf16.msra.mxu1 %v3673_v59  ;;  %2744 = vmatpush1.bf16.msra.mxu0 %v3676_v60  ;;  %v3754_v59 = vld [vmem:[%s4995_s8 + $0x178] ss:$20 sps:$4 sm:$0xff]   ;;  %v3751_v60 = vld [vmem:[%s4995_s8 + $0x148] ss:$20 sps:$4 sm:$0xff]  }
 0x38c   :  { %2704 = vmatprep.subr.bf16.mxu1 %v3681_v61  ;;  %2745 = vmatprep.subr.bf16.mxu0 %v3684_v62  ;;  %v3755_v61 = vld [vmem:[%s4995_s8 + $0x38] ss:$20 sps:$4 sm:$0xff]   ;;  %v3756_v62 = vld [vmem:[%s4995_s8 + $0x150] ss:$20 sps:$4 sm:$0xff]  }
 0x38f   :  { %2705 = vmatpush1.bf16.msra.mxu1 %v3679_v63  ;;  %2746 = vmatpush1.bf16.msra.mxu0 %v3682_v0  ;;  %v3757_v63 = vld [vmem:[%s4995_s8 + $0x10] ss:$20 sps:$4 sm:$0xff]   ;;  %v3758_v0 = vld [vmem:[%s4995_s8 + $0x3a8] ss:$20 sps:$4 sm:$0xff]  }
 0x390   :  { %2706 = vmatprep.subr.bf16.mxu1 %v3687_v1  ;;  %2747 = vmatprep.subr.bf16.mxu0 %v3690_v2  ;;  %v3759_v1 = vld [vmem:[%s4995_s8 + $0x380] ss:$20 sps:$4 sm:$0xff]   ;;  %v3760_v2 = vld [vmem:[%s4995_s8 + $0x358] ss:$20 sps:$4 sm:$0xff]  }
 0x393   :  { %2707 = vmatpush1.bf16.msra.mxu1 %v3685_v3  ;;  %2748 = vmatpush1.bf16.msra.mxu0 %v3688_v4  ;;  %v3761_v3 = vld [vmem:[%s4995_s8 + $0x330] ss:$20 sps:$4 sm:$0xff]   ;;  %v3764_v4 = vld [vmem:[%s4995_s8 + $0x2b8] ss:$20 sps:$4 sm:$0xff]  }
 0x394   :  { %2708 = vmatprep.subr.bf16.mxu1 %v3693_v5  ;;  %2749 = vmatprep.subr.bf16.mxu0 %v3696_v8  ;;  %v3765_v5 = vld [vmem:[%s4995_s8 + $0x290] ss:$20 sps:$4 sm:$0xff]  }
 0x395   :  { %v3766_v8 = vld [vmem:[%s4995_s8 + $0x3d0] ss:$20 sps:$4 sm:$0xff]  }
 0x397   :  { %2709 = vmatpush1.bf16.msra.mxu1 %v3691_v9  ;;  %2750 = vmatpush1.bf16.msra.mxu0 %v3694_v10  ;;  %v4969_v9 = vld [vmem:[%s4996_s9] sm:$0x1f] }
 0x398   :  { %2710 = vmatprep.subr.bf16.mxu1 %v3699_v11  ;;  %2751 = vmatprep.subr.bf16.mxu0 %v3702_v12  ;;  %v1943_v10 = vrot.slane %v4969_v9, %v4495_v14  ;;  %v1947_v11 = vrot.slane %v4969_v9, %v4501_v17 }
 0x39b   :  { %2711 = vmatpush1.bf16.msra.mxu1 %v3697_v15  ;;  %2752 = vmatpush1.bf16.msra.mxu0 %v3700_v18 }
 0x39c   :  { %2712 = vmatprep.subr.bf16.mxu1 %v3705_v19  ;;  %2753 = vmatprep.subr.bf16.mxu0 %v3708_v20 }
 0x39f   :  { %2713 = vmatpush1.bf16.msra.mxu1 %v3703_v21  ;;  %2754 = vmatpush1.bf16.msra.mxu0 %v3706_v6 }
 0x3a0   :  { %2714 = vmatprep.subr.bf16.mxu1 %v3711_v22  ;;  %2755 = vmatprep.subr.bf16.mxu0 %v3714_v23 }
 0x3a3   :  { %2715 = vmatpush1.bf16.msra.mxu1 %v3709_v24  ;;  %2756 = vmatpush1.bf16.msra.mxu0 %v3712_v25 }
 0x3a4   :  { %2716 = vmatprep.subr.bf16.mxu1 %v3717_v26  ;;  %2771 = vmatprep.subr.bf16.mxu0 %v3720_v27 }
 0x3a7   :  { %2717 = vmatpush2.bf16.msra.mxu1 %v3715_v28  ;;  %2772 = vmatpush2.bf16.msra.mxu0 %v3718_v29 }
 0x3a8   :  { %2718 = vmatprep.subr.bf16.mxu1 %v3723_v30  ;;  %3280 = vmatprep.subr.bf16.mxu0 %v3724_v31 }
 0x3aa   :  { %2774 = vmatmul.mubr.bf16.vlgmr.msra.gmra.mxu0 %v4727_v56 }
 0x3ab   :  { %2719 = vmatpush2.bf16.msra.mxu1 %v3721_v32  ;;  %3281 = vmatpush3.bf16.msra.mxu0 %v3725_v33 }
 0x3ac   :  { %2814 = vmatprep.mubr.bf16.mxu0 %v4715_v52  ;;  %2720 = vmatprep.subr.bf16.mxu1 %v3728_v34  ;;  %v3748_v52 = vld [vmem:[%s4995_s8 + $0x174] ss:$20 sps:$4 sm:$0xff]  }
 0x3ad   :  { %3282 = vmatprep.subr.bf16.mxu0 %v3729_v35 }
 0x3af   :  { %2721 = vmatpush2.bf16.msra.mxu1 %v3726_v36  ;;  %3283 = vmatpush3.bf16.msra.mxu0 %v3730_v39 }
 0x3b0   :  { %2722 = vmatprep.subr.bf16.mxu1 %v3733_v40  ;;  %3284 = vmatprep.subr.bf16.mxu0 %v3734_v42 }
 0x3b3   :  { %2723 = vmatpush2.bf16.msra.mxu1 %v3731_v43  ;;  %3285 = vmatpush3.bf16.msra.mxu0 %v3735_v44 }
 0x3b4   :  { %2724 = vmatprep.subr.bf16.mxu1 %v3738_v45  ;;  %3286 = vmatprep.subr.bf16.mxu0 %v3739_v46 }
 0x3b7   :  { %2725 = vmatpush2.bf16.msra.mxu1 %v3736_v47  ;;  %3287 = vmatpush3.bf16.msra.mxu0 %v3740_v48 }
 0x3b8   :  { %2726 = vmatprep.subr.bf16.mxu1 %v3743_v7  ;;  %3288 = vmatprep.subr.bf16.mxu0 %v3744_v41 }
 0x3bb   :  { %2727 = vmatpush2.bf16.msra.mxu1 %v3741_v49  ;;  %3289 = vmatpush3.bf16.msra.mxu0 %v3745_v50 }
 0x3bc   :  { %2728 = vmatprep.subr.bf16.mxu1 %v3748_v52  ;;  %3290 = vmatprep.subr.bf16.mxu0 %v3749_v51 }
 0x3bf   :  { %2729 = vmatpush2.bf16.msra.mxu1 %v3746_v54  ;;  %3291 = vmatpush3.bf16.msra.mxu0 %v3750_v57 }
 0x3c0   :  { %2730 = vmatprep.subr.bf16.mxu1 %v3753_v58  ;;  %3292 = vmatprep.subr.bf16.mxu0 %v3754_v59 }
 0x3c3   :  { %2731 = vmatpush2.bf16.msra.mxu1 %v3751_v60  ;;  %3293 = vmatpush3.bf16.msra.mxu0 %v3755_v61 }
 0x3c4   :  { %3294 = vmatprep.subr.bf16.mxu0 %v3756_v62  ;;  %2822 = vmatprep.subr.bf16.mxu1 %v3833_v16 }
 0x3c6   :  { %2733 = vmatmul.mubr.bf16.vlgmr.msra.gmra.mxu1 %v4725_v55 }
 0x3c7   :  { %3295 = vmatpush3.bf16.msra.mxu0 %v3757_v63  ;;  %2823 = vmatpush1.bf16.msra.mxu1 %v3758_v0 }
 0x3c8   :  { %3257 = vmatprep.mubr.msk.bf16.mxu1 %vm1504_vm0, %v4717_v53  ;;  %2824 = vmatprep.subr.bf16.mxu1 %v3833_v16  ;;  %v3762_v53 = vld [vmem:[%s4995_s8 + $0x308] ss:$20 sps:$4 sm:$0xff]  }
 0x3ca   :  { %2815 = vmatmul.mubr.bf16.vlgmr.msra.gmra.mxu0 %v4725_v55  ;;  %v3763_v55 = vld [vmem:[%s4995_s8 + $0x2e0] ss:$20 sps:$4 sm:$0xff]   ;;  %s3835_s8 = smov [#allocation4]  }
 0x3cb   :  { %2825 = vmatpush1.bf16.msra.mxu1 %v3759_v1  ;;  %s2910_s9 = sshll.u32 %s3835_s8, 4  ;;  %s2911_s9 = int_to_ptr.vmem [resolvable:$true] %s2910_s9 }
 0x3cc   :  { %2826 = vmatprep.subr.bf16.mxu1 %v3833_v16  ;;  %s3789_s14 = scalar_lea.vmem %s2911_s9, 128  ;;  %p3794_p1 = scmp.lt.s32.totalorder %s2911_s9, %s2911_s9 }
 0x3cd   :  { %p3790_p0 = scmp.ne.s32.totalorder %s2911_s9, %s3789_s14  ;;  %p3795_p2 = scmp.lt.s32.totalorder %s3789_s14, %s3789_s14 }
 0x3cf   :  { %2827 = vmatpush1.bf16.msra.mxu1 %v3760_v2  ;;  %p3796_p3 = por %p3795_p2, %p3794_p1 }
 0x3d0   :  { %2828 = vmatprep.subr.bf16.mxu1 %v3833_v16 }
 0x3d1   :  { %p3797_p4 = pnand %p3796_p3, %p3790_p0 }
 0x3d3   :  { %2829 = vmatpush1.bf16.msra.mxu1 %v3761_v3 }
 0x3d4   :  { %2830 = vmatprep.subr.bf16.mxu1 %v3833_v16 }
 0x3d7   :  { %2831 = vmatpush1.bf16.msra.mxu1 %v3762_v53 }
 0x3d8   :  { %2832 = vmatprep.subr.bf16.mxu1 %v3833_v16 }
 0x3db   :  { %2833 = vmatpush1.bf16.msra.mxu1 %v3763_v55 }
 0x3dc   :  { %2834 = vmatprep.subr.bf16.mxu1 %v3833_v16 }
 0x3df   :  { %2835 = vmatpush1.bf16.msra.mxu1 %v3764_v4 }
 0x3e0   :  { %2836 = vmatprep.subr.bf16.mxu1 %v3833_v16 }
 0x3e3   :  { %2837 = vmatpush1.bf16.msra.mxu1 %v3765_v5 }
 0x3e4   :  { %2852 = vmatprep.subr.bf16.mxu1 %v3833_v16 }
 0x3e7   :  { %2853 = vmatpush2.bf16.msra.mxu1 %v3766_v8 }
 0x3ea   :  { %2855 = vmatmul.mubr.bf16.vlgmr.msra.gmra.mxu1 %v4727_v56 }
 0x446   :  { %v2652_v12 = vpop.f32.mrf.mxu0  ;;  %v2693_v15 = vpop.f32.mrf.mxu1 }
 0x447   :  { %v2653_v18 = vadd.f32 %v2652_v12, %v1943_v10 }
 0x448   :  { %v2654_v19 = vpop.f32.mrf.mxu0  ;;  %v2695_v20 = vpop.f32.mrf.mxu1 }
 0x449   :  { %v2694_v16 = vadd.f32 %v2693_v15, %v2653_v18  ;;  %v2655_v21 = vadd.f32 %v2654_v19, %v1947_v11 }
 0x44a   :  { %v2656_v6 = vpop.f32.mrf.mxu0  ;;  %v2697_v56 = vpop.f32.mrf.mxu1 }
 0x44b   :  { %v2862_v22 = vsub.f32 0.0, %v2694_v16  ;;  %v2696_v23 = vadd.f32 %v2695_v20, %v2655_v21 }
 0x44c   :  { %v2657_v24 = vpop.f32.mrf.mxu0  ;;  %v2698_v25 = vpop.f32.mrf.mxu1 }
 0x44d   :  { %v2867_v26 = vmul.f32 1.442695, %v2862_v22  ;;  %v2863_v27 = vsub.f32 0.0, %v2696_v23 }
 0x44f   :  { %3769 = vpow2.f32 %v2867_v26  ;;  %v2869_v14 = vmul.f32 1.442695, %v2863_v27 }
 0x451   :  { %3771 = vpow2.f32 %v2869_v14 }
 0x452   :  { %3800 = shalt.err (!%p3797_p4)
}
 0x453   :  { %2913 = dma.vmem_to_hbm [thread:$0]  %s2911_s9, 128, %s4998_s11, [#allocation5]   ;;  %v1951_v39 = vrot.slane %v4969_v9, %v4507_v37  ;;  %v1955_v40 = vrot.slane %v4969_v9, %v4510_v38  ;;  %v1958_v61 = vsub.s32 4, %v4492_v13 }
 0x454   :  { %s3836_s11 = smov [#allocation2]  }
 0x455   :  { %v1959_v63 = vrot.slane %v4969_v9, %v1958_v61  ;;  %s2900_s17 = sshll.u32 %s3836_s11, 4  ;;  %s2901_s17 = int_to_ptr.vmem [resolvable:$true] %s2900_s17 }
 0x456   :  { %s3809_s0 = scalar_lea.vmem %s2901_s17, 640  ;;  %p3814_p6 = scmp.lt.s32.totalorder %s2901_s17, %s2901_s17 }
 0x457   :  { %p3810_p5 = scmp.ne.s32.totalorder %s2901_s17, %s3809_s0  ;;  %p3815_p7 = scmp.lt.s32.totalorder %s3809_s0, %s3809_s0 }
 0x459   :  { %p3816_p8 = por %p3815_p7, %p3814_p6 }
 0x45b   :  { %p3817_p9 = pnand %p3816_p8, %p3810_p5 }
 0x45c   :  { %v3770_v17 = vpop.eup %3769 }
 0x45d   :  { %v2877_v28 = vadd.f32 1.0, %v3770_v17 }
 0x45e   :  { %v3772_v29 = vpop.eup %3771 }
 0x45f   :  { %3773 = vrcp.f32 %v2877_v28  ;;  %v2878_v30 = vadd.f32 1.0, %v3772_v29 }
 0x461   :  { %3775 = vrcp.f32 %v2878_v30 }
 0x46a   :  { %v2775_v31 = vpop.f32.mrf.mxu0 }
 0x46c   :  { %v3774_v32 = vpop.eup %3773  ;;  %v2777_v33 = vpop.f32.mrf.mxu0 }
 0x46d   :  { %2887 = vst [vmem:[#allocation2] sm:$0xff] %v3774_v32 }
 0x46e   :  { %v3776_v34 = vpop.eup %3775  ;;  %v2779_v35 = vpop.f32.mrf.mxu0 }
 0x46f   :  { %2888 = vst [vmem:[#allocation2 + $0x8] sm:$0xff] %v3776_v34 }
 0x470   :  { %v2780_v36 = vpop.f32.mrf.mxu0 }
 0x486   :  { %v2734_v42 = vpop.f32.mrf.mxu1 }
 0x487   :  { %v2735_v43 = vadd.f32 %v2734_v42, %v1951_v39 }
 0x488   :  { %v2736_v44 = vpop.f32.mrf.mxu1 }
 0x489   :  { %v2776_v45 = vadd.f32 %v2775_v31, %v2735_v43  ;;  %v2737_v46 = vadd.f32 %v2736_v44, %v1955_v40 }
 0x48a   :  { %v2738_v47 = vpop.f32.mrf.mxu1  ;;  %v3296_v48 = vpop.f32.mrf.mxu0 }
 0x48b   :  { %v2864_v7 = vsub.f32 0.0, %v2776_v45  ;;  %v2778_v41 = vadd.f32 %v2777_v33, %v2737_v46 }
 0x48c   :  { %v2739_v49 = vpop.f32.mrf.mxu1  ;;  %v3297_v50 = vpop.f32.mrf.mxu0 }
 0x48d   :  { %v2871_v52 = vmul.f32 1.442695, %v2864_v7  ;;  %v2865_v51 = vsub.f32 0.0, %v2778_v41  ;;  %v3298_v62 = vadd.f32 %v3297_v50, %v3296_v48 }
 0x48e   :  { %v3299_v54 = vpop.f32.mrf.mxu0 }
 0x48f   :  { %3777 = vpow2.f32 %v2871_v52  ;;  %v2873_v57 = vmul.f32 1.442695, %v2865_v51  ;;  %v2817_v0 = vadd.f32 %v3298_v62, %v1959_v63 }
 0x490   :  { %v3300_v37 = vpop.f32.mrf.mxu0 }
 0x491   :  { %3779 = vpow2.f32 %v2873_v57 }
 0x49c   :  { %v3778_v58 = vpop.eup %3777 }
 0x49d   :  { %v2879_v38 = vadd.f32 1.0, %v3778_v58 }
 0x49e   :  { %v3780_v59 = vpop.eup %3779 }
 0x49f   :  { %3781 = vrcp.f32 %v2879_v38  ;;  %v2880_v60 = vadd.f32 1.0, %v3780_v59 }
 0x4a1   :  { %3783 = vrcp.f32 %v2880_v60 }
 0x4aa   :  { %v2856_v1 = vpop.f32.mrf.mxu1 }
 0x4ab   :  { %v2857_v2 = vadd.f32 %v2856_v1, %v2817_v0 }
 0x4ac   :  { %v3782_v3 = vpop.eup %3781  ;;  %v2858_v53 = vpop.f32.mrf.mxu1 }
 0x4ad   :  { %2889 = vst [vmem:[#allocation2 + $0x10] sm:$0xff] %v3782_v3  ;;  %v2866_v55 = vsub.f32 0.0, %v2857_v2 }
 0x4ae   :  { %v3784_v4 = vpop.eup %3783  ;;  %v2859_v5 = vpop.f32.mrf.mxu1 }
 0x4af   :  { %2890 = vst [vmem:[#allocation2 + $0x18] sm:$0xff] %v3784_v4  ;;  %v2875_v8 = vmul.f32 1.442695, %v2866_v55 }
 0x4b0   :  { %v2860_v10 = vpop.f32.mrf.mxu1 }
 0x4b1   :  { %3785 = vpow2.f32 %v2875_v8 }
 0x4be   :  { %v3786_v11 = vpop.eup %3785 }
 0x4bf   :  { %v2881_v12 = vadd.f32 1.0, %v3786_v11 }
 0x4c1   :  { %3787 = vrcp.f32 %v2881_v12 }
 0x4ce   :  { %v3788_v13 = vpop.eup %3787 }
 0x4cf   :  { %2891 = vst [vmem:[#allocation2 + $0x20] sm:$0xff] %v3788_v13 }
 0x4d0   :  { %3820 = shalt.err (!%p3817_p9)
}
 0x4d1   :  { %2903 = dma.vmem_to_hbm [thread:$0]  %s2901_s17, 640, %s4997_s10, [#allocation3]  }
 0x4d2   :  { %3829 = dma.done.wait [#allocation3], 640  }
 0x4d3   :  { %3830 = vsyncadd [#allocation3], 4294966656 }
 0x4d4   :  { %3831 = dma.done.wait [#allocation5], 128  }
 0x4d5   :  { %3832 = vsyncadd [#allocation5], 4294967168 }
 0x4d6   :  { %2920 = vsyncpa [#allocation3], 1 }
 0x4d7   :  { %2921 = vsyncpa [#allocation5], 1 }

</bundles_post_ra>
